<compile_context>
chip_gen: v6e
topology: v6e:2x2x1
jax: 0.10.0
libtpu: 0.0.40
codegen_flags: <defaults>
</compile_context>

<pallas_src>
import functools

import jax
import jax.numpy as jnp
from jax.experimental import pallas as pl
from jax.experimental.pallas import tpu as pltpu

# ---------------- problem sizes (small, consistent with the module) ----------------
BATCH = 32
N_OBS = 16
HIDDEN = 320
N_ACTIONS = 4
ATOMS = 51           # distributional_atom_size
V_MIN, V_MAX = -10.0, 10.0

LANE = 128
ATOMS_PAD = 128      # per-action atom stride, lane aligned (free slices)
Q_PAD = 128          # padded q output width (lane-dense store; sliced in wrapper)
NEG_INF = -1e30


def qnet_kernel(state_ref, w1_ref, b1_ref, wh_ref, bh_ref, zblk_ref, q_ref, *,
                n_actions, atoms_pad):
    # layer1 + relu (MXU matmul, f32 accumulation; bias add + relu on VPU in f32)
    x = jnp.dot(state_ref[...], w1_ref[...], preferred_element_type=jnp.float32)
    x = jnp.maximum(x + b1_ref[...], 0.0)                       # (TB, H_PAD) f32

    # fused value + advantage head: ONE MXU matmul, lane-dense (1+A)*128 output
    head = jnp.dot(x.astype(wh_ref.dtype), wh_ref[...],
                   preferred_element_type=jnp.float32) + bh_ref[...]

    P = atoms_pad
    v = head[:, :P]                                             # pad lanes = -1e30 (bias)
    a = [head[:, (1 + i) * P:(2 + i) * P] for i in range(n_actions)]  # aligned views

    a_mean = a[0]
    for i in range(1, n_actions):
        a_mean = a_mean + a[i]
    a_mean = a_mean * (1.0 / n_actions)                         # mean over actions (keepdim)

    # per-action softmax + clamp, then accumulate A small aligned MXU dots
    # against the block-diagonal support matrix (padded rows of zblk are zero).
    q_acc = None
    for i in range(n_actions):
        q_atoms = v + a[i] - a_mean                             # pad lanes -> -1e30
        m = jnp.max(q_atoms, axis=-1, keepdims=True)
        e = jnp.exp(q_atoms - m)                                # pad lanes -> 0
        inv = pl.reciprocal(jnp.sum(e, axis=-1, keepdims=True))  # exact (parity w/ torch)
        dist = jnp.maximum(e * inv, 0.001)                      # clamp(min=0.001)
        contrib = jnp.dot(dist, zblk_ref[i * P:(i + 1) * P, :],
                          preferred_element_type=jnp.float32)   # (TB, 128)
        q_acc = contrib if q_acc is None else q_acc + contrib

    q_ref[...] = q_acc                                          # lane-dense 128-wide store


def prepare_qnet_weights(params, support_z, *, n_actions=N_ACTIONS, atoms=ATOMS,
                         matmul_dtype=jnp.bfloat16):
    """Build padded/fused weight arrays ONCE per parameter update (hoisted out of
    the per-call path). Returns (w1_p, b1_p, wh, bh, zblk)."""
    w1, b1, wv, bv, wa, ba = params
    H, n_obs = w1.shape
    H_PAD = pl.cdiv(H, LANE) * LANE
    P = ATOMS_PAD
    A = n_actions
    f32 = jnp.float32

    w1_p = jnp.zeros((n_obs, H_PAD), f32).at[:, :H].set(w1.T)
    b1_p = jnp.zeros((1, H_PAD), f32).at[:, :H].set(b1)

    # fused [value | advantage_0 .. advantage_{A-1}] head, each block 128-lane strided
    wh = jnp.zeros((H_PAD, (1 + A) * P), f32)
    bh = jnp.zeros((1, (1 + A) * P), f32)
    wh = wh.at[:H, :atoms].set(wv.T)
    bh = bh.at[0, :atoms].set(bv)
    # invariant (a): NEG_INF only in the VALUE block's pad lanes (masks softmax);
    # advantage pad lanes stay 0 so a_mean is unaffected.
    bh = bh.at[0, atoms:P].set(NEG_INF)
    for i in range(A):
        c0 = (1 + i) * P
        wh = wh.at[:H, c0:c0 + atoms].set(wa.T[:, i * atoms:(i + 1) * atoms])
        bh = bh.at[0, c0:c0 + atoms].set(ba[i * atoms:(i + 1) * atoms])

    # invariant (b): block-diagonal support matrix (A*P, 128); padded atom rows and
    # action columns >= A are exactly zero so the 0.001 clamp on pad lanes can't leak.
    zblk = jnp.zeros((A * P, Q_PAD), f32)
    for i in range(A):
        zblk = zblk.at[i * P:i * P + atoms, i].set(support_z)

    # bf16 (default) halves the dominant weight DMA; biases / zblk stay f32.
    w1_p = w1_p.astype(matmul_dtype)
    wh = wh.astype(matmul_dtype)
    return (w1_p, b1_p, wh, bh, zblk)


def qnet_forward(state, prepared, *, n_actions=N_ACTIONS, block_b=None):
    """state: (B, n_obs) f32; prepared: output of prepare_qnet_weights.
    Returns Q-values (B, n_actions) f32.

    block_b=None -> whole batch in ONE grid step (best on v5e/v6e, single TC).
    For v7x's 2 TensorCores, pass block_b = ceil(B/2) rounded up to 8 to get two
    "parallel" grid steps."""
    w1_p, b1_p, wh, bh, zblk = prepared
    B, n_obs = state.shape
    H_PAD = w1_p.shape[1]
    P = ATOMS_PAD
    A = n_actions

    if block_b is None:
        block_b = max(8, pl.cdiv(B, 8) * 8)     # single grid step over the padded batch
    nb = pl.cdiv(B, block_b)
    B_pad = nb * block_b
    if B_pad != B:
        state = jnp.pad(state, ((0, B_pad - B), (0, 0)))
    state_p = state.astype(w1_p.dtype)

    kernel = functools.partial(qnet_kernel, n_actions=A, atoms_pad=P)
    full = lambda i: (0, 0)   # whole-array weight blocks: VMEM-resident across grid steps

    q_pad = pl.pallas_call(
        kernel,
        out_shape=jax.ShapeDtypeStruct((B_pad, Q_PAD), jnp.float32),
        grid_spec=pltpu.PrefetchScalarGridSpec(
            num_scalar_prefetch=0,
            grid=(nb,),
            in_specs=[
                pl.BlockSpec((block_b, n_obs), lambda i: (i, 0)),
                pl.BlockSpec((n_obs, H_PAD), full),
                pl.BlockSpec((1, H_PAD), full),
                pl.BlockSpec((H_PAD, (1 + A) * P), full),
                pl.BlockSpec((1, (1 + A) * P), full),
                pl.BlockSpec((A * P, Q_PAD), full),
            ],
            out_specs=pl.BlockSpec((block_b, Q_PAD), lambda i: (i, 0)),
        ),
        compiler_params=pltpu.CompilerParams(
            dimension_semantics=("parallel",),   # batch axis shards across v7x's 2 TCs
        ),
    )(state_p, w1_p, b1_p, wh, bh, zblk)

    return q_pad[:B, :A]


def init_params(key):
    """Deterministic init mimicking torch.nn.Linear default (U[-1/sqrt(fan_in), ...])."""
    ks = jax.random.split(key, 6)

    def lin(kw, kb, fan_in, fan_out):
        bound = 1.0 / (fan_in ** 0.5)
        w = jax.random.uniform(kw, (fan_out, fan_in), jnp.float32, -bound, bound)
        b = jax.random.uniform(kb, (fan_out,), jnp.float32, -bound, bound)
        return w, b

    w1, b1 = lin(ks[0], ks[1], N_OBS, HIDDEN)
    wv, bv = lin(ks[2], ks[3], HIDDEN, ATOMS)
    wa, ba = lin(ks[4], ks[5], HIDDEN, N_ACTIONS * ATOMS)
    return (w1, b1, wv, bv, wa, ba)


def qnet_reference(state, params, support_z):
    """Pure-JAX reference matching the PyTorch forward (return_dist=False)."""
    w1, b1, wv, bv, wa, ba = params
    x = jnp.maximum(state @ w1.T + b1, 0.0)
    v = (x @ wv.T + bv).reshape(-1, 1, ATOMS)
    a = (x @ wa.T + ba).reshape(-1, N_ACTIONS, ATOMS)
    q_atoms = v + a - a.mean(axis=1, keepdims=True)
    dist = jnp.maximum(jax.nn.softmax(q_atoms, axis=-1), 0.001)   # clamp(min=0.001)
    return jnp.sum(dist * support_z, axis=2)


if __name__ == "__main__":
    key = jax.random.PRNGKey(0)
    kp, kx = jax.random.split(key)
    params = init_params(kp)
    state = jax.random.normal(kx, (BATCH, N_OBS), jnp.float32)
    support_z = jnp.linspace(V_MIN, V_MAX, ATOMS, dtype=jnp.float32)
    q_ref = qnet_reference(state, params, support_z)

    # f32 matmul path (primary correctness check; exact reciprocal -> tight tolerance).
    prepared_f32 = jax.tree_util.tree_map(
        jax.block_until_ready,
        prepare_qnet_weights(params, support_z, matmul_dtype=jnp.float32))
    q = jax.block_until_ready(qnet_forward(state, prepared_f32))
    assert q.shape == (BATCH, N_ACTIONS)
    assert jnp.allclose(q, q_ref, atol=1e-4, rtol=1e-4)

    # bf16 matmul path (default; MXU-native, halves the weight DMA). Loose sanity check.
    prepared_bf16 = jax.tree_util.tree_map(
        jax.block_until_ready,
        prepare_qnet_weights(params, support_z))           # matmul_dtype=bf16 default
    q_bf = jax.block_until_ready(qnet_forward(state, prepared_bf16))
    assert q_bf.shape == (BATCH, N_ACTIONS)
    assert bool(jnp.all(jnp.isfinite(q_bf)))
    assert float(jnp.max(jnp.abs(q_bf - q_ref))) < 0.5

    # v7x-style split: 2 "parallel" grid steps of 16 rows (smoke check only).
    q_2tc = jax.block_until_ready(qnet_forward(state, prepared_f32, block_b=16))
    assert jnp.allclose(q_2tc, q_ref, atol=1e-4, rtol=1e-4)

    print("KERNEL_OK")
</pallas_src>

<mosaic_0001>
module attributes {stable_mosaic.version = 11 : i64} {
  func.func @qnet_kernel(%arg0: i32, %arg1: memref<32x16xf32, #tpu.memory_space<vmem>>, %arg2: memref<16x384xf32, #tpu.memory_space<vmem>>, %arg3: memref<1x384xf32, #tpu.memory_space<vmem>>, %arg4: memref<384x640xf32, #tpu.memory_space<vmem>>, %arg5: memref<1x640xf32, #tpu.memory_space<vmem>>, %arg6: memref<512x128xf32, #tpu.memory_space<vmem>>, %arg7: memref<32x128xf32, #tpu.memory_space<vmem>>) attributes {dimension_semantics = [#tpu.dimension_semantics<parallel>], iteration_bounds = array<i64: 1>, scalar_prefetch = 0 : i64, scratch_operands = 0 : i64, tpu.core_type = #tpu.core_type<tc>, window_params = [{transform_indices = @transform_0, window_bounds = array<i64: 32, 16>}, {pipeline_mode = #tpu.pipeline_mode<synchronous>, transform_indices = @transform_1, window_bounds = array<i64: 16, 384>}, {pipeline_mode = #tpu.pipeline_mode<synchronous>, transform_indices = @transform_2, window_bounds = array<i64: 1, 384>}, {pipeline_mode = #tpu.pipeline_mode<synchronous>, transform_indices = @transform_3, window_bounds = array<i64: 384, 640>}, {pipeline_mode = #tpu.pipeline_mode<synchronous>, transform_indices = @transform_4, window_bounds = array<i64: 1, 640>}, {pipeline_mode = #tpu.pipeline_mode<synchronous>, transform_indices = @transform_5, window_bounds = array<i64: 512, 128>}, {transform_indices = @transform_6, window_bounds = array<i64: 32, 128>}]} {
    %c0 = arith.constant 0 : index
    %c0_0 = arith.constant 0 : index
    %0 = vector.load %arg1[%c0, %c0_0] : memref<32x16xf32, #tpu.memory_space<vmem>>, vector<32x16xf32>
    %c0_1 = arith.constant 0 : index
    %c0_2 = arith.constant 0 : index
    %1 = vector.load %arg2[%c0_1, %c0_2] : memref<16x384xf32, #tpu.memory_space<vmem>>, vector<16x384xf32>
    %cst = arith.constant dense<0.000000e+00> : vector<32x384xf32>
    %2 = tpu.matmul %0, %1, %cst {dimension_numbers = #tpu.dot_dimension_numbers<[1], [0], [0], [1], [0, 0, 1, 1], [], []>} : vector<32x16xf32>, vector<16x384xf32>, vector<32x384xf32> -> vector<32x384xf32>
    %c0_3 = arith.constant 0 : index
    %c0_4 = arith.constant 0 : index
    %3 = vector.load %arg3[%c0_3, %c0_4] : memref<1x384xf32, #tpu.memory_space<vmem>>, vector<1x384xf32>
    %4 = vector.broadcast %3 : vector<1x384xf32> to vector<32x384xf32>
    %5 = arith.addf %2, %4 : vector<32x384xf32>
    %cst_5 = arith.constant 0.000000e+00 : f32
    %6 = vector.broadcast %cst_5 : f32 to vector<32x384xf32>
    %7 = arith.maximumf %5, %6 : vector<32x384xf32>
    %c0_6 = arith.constant 0 : index
    %c0_7 = arith.constant 0 : index
    %8 = vector.load %arg4[%c0_6, %c0_7] : memref<384x640xf32, #tpu.memory_space<vmem>>, vector<384x640xf32>
    %cst_8 = arith.constant dense<0.000000e+00> : vector<32x640xf32>
    %9 = tpu.matmul %7, %8, %cst_8 {dimension_numbers = #tpu.dot_dimension_numbers<[1], [0], [0], [1], [0, 0, 1, 1], [], []>} : vector<32x384xf32>, vector<384x640xf32>, vector<32x640xf32> -> vector<32x640xf32>
    %c0_9 = arith.constant 0 : index
    %c0_10 = arith.constant 0 : index
    %10 = vector.load %arg5[%c0_9, %c0_10] : memref<1x640xf32, #tpu.memory_space<vmem>>, vector<1x640xf32>
    %11 = vector.broadcast %10 : vector<1x640xf32> to vector<32x640xf32>
    %12 = arith.addf %9, %11 : vector<32x640xf32>
    %13 = vector.extract_strided_slice %12 {offsets = [0, 0], sizes = [32, 128], strides = [1, 1]} : vector<32x640xf32> to vector<32x128xf32>
    %14 = vector.extract_strided_slice %12 {offsets = [0, 128], sizes = [32, 128], strides = [1, 1]} : vector<32x640xf32> to vector<32x128xf32>
    %15 = vector.extract_strided_slice %12 {offsets = [0, 256], sizes = [32, 128], strides = [1, 1]} : vector<32x640xf32> to vector<32x128xf32>
    %16 = vector.extract_strided_slice %12 {offsets = [0, 384], sizes = [32, 128], strides = [1, 1]} : vector<32x640xf32> to vector<32x128xf32>
    %17 = vector.extract_strided_slice %12 {offsets = [0, 512], sizes = [32, 128], strides = [1, 1]} : vector<32x640xf32> to vector<32x128xf32>
    %18 = arith.addf %14, %15 : vector<32x128xf32>
    %19 = arith.addf %18, %16 : vector<32x128xf32>
    %20 = arith.addf %19, %17 : vector<32x128xf32>
    %cst_11 = arith.constant 2.500000e-01 : f32
    %21 = vector.broadcast %cst_11 : f32 to vector<32x128xf32>
    %22 = arith.mulf %20, %21 : vector<32x128xf32>
    %23 = arith.addf %13, %14 : vector<32x128xf32>
    %24 = arith.subf %23, %22 : vector<32x128xf32>
    %cst_12 = arith.constant dense<0xFF800000> : vector<32xf32>
    %25 = vector.multi_reduction <maximumf>, %24, %cst_12 [1] : vector<32x128xf32> to vector<32xf32>
    %26 = vector.shape_cast %25 : vector<32xf32> to vector<32x1xf32>
    %27 = vector.broadcast %26 : vector<32x1xf32> to vector<32x128xf32>
    %28 = arith.subf %24, %27 : vector<32x128xf32>
    %29 = math.exp %28 : vector<32x128xf32>
    %cst_13 = arith.constant dense<0.000000e+00> : vector<32xf32>
    %30 = vector.multi_reduction <add>, %29, %cst_13 [1] : vector<32x128xf32> to vector<32xf32>
    %31 = vector.shape_cast %30 : vector<32xf32> to vector<32x1xf32>
    %32 = tpu.reciprocal %31 : vector<32x1xf32> -> vector<32x1xf32>
    %33 = vector.broadcast %32 : vector<32x1xf32> to vector<32x128xf32>
    %34 = arith.mulf %29, %33 : vector<32x128xf32>
    %cst_14 = arith.constant 1.000000e-03 : f32
    %35 = vector.broadcast %cst_14 : f32 to vector<32x128xf32>
    %36 = arith.maximumf %34, %35 : vector<32x128xf32>
    %c0_15 = arith.constant 0 : index
    %c0_16 = arith.constant 0 : index
    %37 = vector.load %arg6[%c0_15, %c0_16] : memref<512x128xf32, #tpu.memory_space<vmem>>, vector<128x128xf32>
    %cst_17 = arith.constant dense<0.000000e+00> : vector<32x128xf32>
    %38 = tpu.matmul %36, %37, %cst_17 {dimension_numbers = #tpu.dot_dimension_numbers<[1], [0], [0], [1], [0, 0, 1, 1], [], []>} : vector<32x128xf32>, vector<128x128xf32>, vector<32x128xf32> -> vector<32x128xf32>
    %39 = arith.addf %13, %15 : vector<32x128xf32>
    %40 = arith.subf %39, %22 : vector<32x128xf32>
    %cst_18 = arith.constant dense<0xFF800000> : vector<32xf32>
    %41 = vector.multi_reduction <maximumf>, %40, %cst_18 [1] : vector<32x128xf32> to vector<32xf32>
    %42 = vector.shape_cast %41 : vector<32xf32> to vector<32x1xf32>
    %43 = vector.broadcast %42 : vector<32x1xf32> to vector<32x128xf32>
    %44 = arith.subf %40, %43 : vector<32x128xf32>
    %45 = math.exp %44 : vector<32x128xf32>
    %cst_19 = arith.constant dense<0.000000e+00> : vector<32xf32>
    %46 = vector.multi_reduction <add>, %45, %cst_19 [1] : vector<32x128xf32> to vector<32xf32>
    %47 = vector.shape_cast %46 : vector<32xf32> to vector<32x1xf32>
    %48 = tpu.reciprocal %47 : vector<32x1xf32> -> vector<32x1xf32>
    %49 = vector.broadcast %48 : vector<32x1xf32> to vector<32x128xf32>
    %50 = arith.mulf %45, %49 : vector<32x128xf32>
    %cst_20 = arith.constant 1.000000e-03 : f32
    %51 = vector.broadcast %cst_20 : f32 to vector<32x128xf32>
    %52 = arith.maximumf %50, %51 : vector<32x128xf32>
    %c128 = arith.constant 128 : index
    %c0_21 = arith.constant 0 : index
    %53 = vector.load %arg6[%c128, %c0_21] : memref<512x128xf32, #tpu.memory_space<vmem>>, vector<128x128xf32>
    %cst_22 = arith.constant dense<0.000000e+00> : vector<32x128xf32>
    %54 = tpu.matmul %52, %53, %cst_22 {dimension_numbers = #tpu.dot_dimension_numbers<[1], [0], [0], [1], [0, 0, 1, 1], [], []>} : vector<32x128xf32>, vector<128x128xf32>, vector<32x128xf32> -> vector<32x128xf32>
    %55 = arith.addf %38, %54 : vector<32x128xf32>
    %56 = arith.addf %13, %16 : vector<32x128xf32>
    %57 = arith.subf %56, %22 : vector<32x128xf32>
    %cst_23 = arith.constant dense<0xFF800000> : vector<32xf32>
    %58 = vector.multi_reduction <maximumf>, %57, %cst_23 [1] : vector<32x128xf32> to vector<32xf32>
    %59 = vector.shape_cast %58 : vector<32xf32> to vector<32x1xf32>
    %60 = vector.broadcast %59 : vector<32x1xf32> to vector<32x128xf32>
    %61 = arith.subf %57, %60 : vector<32x128xf32>
    %62 = math.exp %61 : vector<32x128xf32>
    %cst_24 = arith.constant dense<0.000000e+00> : vector<32xf32>
    %63 = vector.multi_reduction <add>, %62, %cst_24 [1] : vector<32x128xf32> to vector<32xf32>
    %64 = vector.shape_cast %63 : vector<32xf32> to vector<32x1xf32>
    %65 = tpu.reciprocal %64 : vector<32x1xf32> -> vector<32x1xf32>
    %66 = vector.broadcast %65 : vector<32x1xf32> to vector<32x128xf32>
    %67 = arith.mulf %62, %66 : vector<32x128xf32>
    %cst_25 = arith.constant 1.000000e-03 : f32
    %68 = vector.broadcast %cst_25 : f32 to vector<32x128xf32>
    %69 = arith.maximumf %67, %68 : vector<32x128xf32>
    %c256 = arith.constant 256 : index
    %c0_26 = arith.constant 0 : index
    %70 = vector.load %arg6[%c256, %c0_26] : memref<512x128xf32, #tpu.memory_space<vmem>>, vector<128x128xf32>
    %cst_27 = arith.constant dense<0.000000e+00> : vector<32x128xf32>
    %71 = tpu.matmul %69, %70, %cst_27 {dimension_numbers = #tpu.dot_dimension_numbers<[1], [0], [0], [1], [0, 0, 1, 1], [], []>} : vector<32x128xf32>, vector<128x128xf32>, vector<32x128xf32> -> vector<32x128xf32>
    %72 = arith.addf %55, %71 : vector<32x128xf32>
    %73 = arith.addf %13, %17 : vector<32x128xf32>
    %74 = arith.subf %73, %22 : vector<32x128xf32>
    %cst_28 = arith.constant dense<0xFF800000> : vector<32xf32>
    %75 = vector.multi_reduction <maximumf>, %74, %cst_28 [1] : vector<32x128xf32> to vector<32xf32>
    %76 = vector.shape_cast %75 : vector<32xf32> to vector<32x1xf32>
    %77 = vector.broadcast %76 : vector<32x1xf32> to vector<32x128xf32>
    %78 = arith.subf %74, %77 : vector<32x128xf32>
    %79 = math.exp %78 : vector<32x128xf32>
    %cst_29 = arith.constant dense<0.000000e+00> : vector<32xf32>
    %80 = vector.multi_reduction <add>, %79, %cst_29 [1] : vector<32x128xf32> to vector<32xf32>
    %81 = vector.shape_cast %80 : vector<32xf32> to vector<32x1xf32>
    %82 = tpu.reciprocal %81 : vector<32x1xf32> -> vector<32x1xf32>
    %83 = vector.broadcast %82 : vector<32x1xf32> to vector<32x128xf32>
    %84 = arith.mulf %79, %83 : vector<32x128xf32>
    %cst_30 = arith.constant 1.000000e-03 : f32
    %85 = vector.broadcast %cst_30 : f32 to vector<32x128xf32>
    %86 = arith.maximumf %84, %85 : vector<32x128xf32>
    %c384 = arith.constant 384 : index
    %c0_31 = arith.constant 0 : index
    %87 = vector.load %arg6[%c384, %c0_31] : memref<512x128xf32, #tpu.memory_space<vmem>>, vector<128x128xf32>
    %cst_32 = arith.constant dense<0.000000e+00> : vector<32x128xf32>
    %88 = tpu.matmul %86, %87, %cst_32 {dimension_numbers = #tpu.dot_dimension_numbers<[1], [0], [0], [1], [0, 0, 1, 1], [], []>} : vector<32x128xf32>, vector<128x128xf32>, vector<32x128xf32> -> vector<32x128xf32>
    %89 = arith.addf %72, %88 : vector<32x128xf32>
    %c0_33 = arith.constant 0 : index
    %c0_34 = arith.constant 0 : index
    %90 = vector.load %arg7[%c0_33, %c0_34] : memref<32x128xf32, #tpu.memory_space<vmem>>, vector<32x128xf32>
    tpu.vector_store %arg7[%c0_33, %c0_34], %89 {strides = array<i32>} : memref<32x128xf32, #tpu.memory_space<vmem>>, vector<32x128xf32>,
    return
  }
  func.func @transform_0(%arg0: i32) -> (i32, i32) {
    %c0_i32 = arith.constant 0 : i32
    %c0_i32_0 = arith.constant 0 : i32
    return %arg0, %c0_i32 : i32, i32
  }
  func.func @transform_1(%arg0: i32) -> (i32, i32) {
    %c0_i32 = arith.constant 0 : i32
    %c0_i32_0 = arith.constant 0 : i32
    %c0_i32_1 = arith.constant 0 : i32
    return %c0_i32, %c0_i32_0 : i32, i32
  }
  func.func @transform_2(%arg0: i32) -> (i32, i32) {
    %c0_i32 = arith.constant 0 : i32
    %c0_i32_0 = arith.constant 0 : i32
    %c0_i32_1 = arith.constant 0 : i32
    return %c0_i32, %c0_i32_0 : i32, i32
  }
  func.func @transform_3(%arg0: i32) -> (i32, i32) {
    %c0_i32 = arith.constant 0 : i32
    %c0_i32_0 = arith.constant 0 : i32
    %c0_i32_1 = arith.constant 0 : i32
    return %c0_i32, %c0_i32_0 : i32, i32
  }
  func.func @transform_4(%arg0: i32) -> (i32, i32) {
    %c0_i32 = arith.constant 0 : i32
    %c0_i32_0 = arith.constant 0 : i32
    %c0_i32_1 = arith.constant 0 : i32
    return %c0_i32, %c0_i32_0 : i32, i32
  }
  func.func @transform_5(%arg0: i32) -> (i32, i32) {
    %c0_i32 = arith.constant 0 : i32
    %c0_i32_0 = arith.constant 0 : i32
    %c0_i32_1 = arith.constant 0 : i32
    return %c0_i32, %c0_i32_0 : i32, i32
  }
  func.func @transform_6(%arg0: i32) -> (i32, i32) {
    %c0_i32 = arith.constant 0 : i32
    %c0_i32_0 = arith.constant 0 : i32
    return %arg0, %c0_i32 : i32, i32
  }
}

</mosaic_0001>

<bundles_post_ra>
// kernel: tpu_custom_call.1
= control target key start
LH: loop header
LB: loop body
LE: loop exit
PB: predicated region body
PF: predicated region fallthrough
CT: control target
= control target key end

     0   :  { %11 = vsyncpa [#allocation3], 0  ;;  %s2641_s0 = inlined_call_operand.vmem [shape: f32[32,16], index: 0, kind: input, shape index: {}]   ;;  %s2642_s1 = inlined_call_operand.vmem [shape: f32[16,384], index: 1, kind: input, shape index: {}]   ;;  %s2643_s2 = inlined_call_operand.hbm [shape: f32[1,384], index: 2, kind: input, shape index: {}]   ;;  %s2644_s3 = inlined_call_operand.hbm [shape: f32[384,640], index: 3, kind: input, shape index: {}]   ;;  %s2645_s4 = inlined_call_operand.vmem [shape: f32[1,640], index: 4, kind: input, shape index: {}]   ;;  %s2646_s5 = inlined_call_operand.hbm [shape: f32[512,128], index: 5, kind: input, shape index: {}]   ;;  %s2647_s6 = inlined_call_operand.hbm [shape: f32[32,128], index: 6, kind: output, shape index: {}]  }
   0x1   :  { %12 = vsyncpa [#allocation6], 0 }
   0x2   :  { %13 = vsyncpa [#allocation4], 0  ;;  %s2241_s21 = smov [#allocation5]  }
   0x3   :  { %s33_s22 = sshll.u32 %s2241_s21, 4  ;;  %s34_s22 = int_to_ptr.vmem [resolvable:$true] %s33_s22 }
   0x4   :  { %s2163_s23 = scalar_lea.vmem %s34_s22, 30720  ;;  %p2168_p1 = scmp.lt.s32.totalorder %s34_s22, %s34_s22 }
   0x5   :  { %p2164_p0 = scmp.ne.s32.totalorder %s34_s22, %s2163_s23  ;;  %p2169_p2 = scmp.lt.s32.totalorder %s2163_s23, %s2163_s23 }
   0x7   :  { %p2170_p3 = por %p2169_p2, %p2168_p1 }
   0x9   :  { %p2171_p4 = pnand %p2170_p3, %p2164_p0 }
   0xb   :  { %2174 = shalt.err (!%p2171_p4)
}
   0xc   :  { %s2242_s24 = smov 640   ;;  %s2243_s25 = smov 40  }
   0xd   :  { %39 = dma.hbm_to_vmem [thread:$0]  %s2644_s3, 30720, %s34_s22, [#allocation6], %s2242_s24, %s2242_s24, %s2243_s25  }
   0xe   :  { %s2244_s28 = smov [#allocation2]   ;;  %s2245_s30 = smov [#allocation7]  }
   0xf   :  { %s24_s29 = sshll.u32 %s2244_s28, 4  ;;  %s47_s7 = sshll.u32 %s2245_s30, 4  ;;  %s25_s29 = int_to_ptr.vmem [resolvable:$true] %s24_s29  ;;  %s48_s7 = int_to_ptr.vmem [resolvable:$true] %s47_s7 }
  0x10   :  { %s2183_s8 = scalar_lea.vmem %s25_s29, 48  ;;  %s2187_s9 = scalar_lea.vmem %s25_s29, 64 }
  0x11   :  { %p2184_p5 = scmp.ne.s32.totalorder %s25_s29, %s2183_s8  ;;  %p2188_p6 = scmp.lt.s32.totalorder %s25_s29, %s25_s29 }
  0x12   :  { %p2189_p7 = scmp.lt.s32.totalorder %s2187_s9, %s2183_s8 }
  0x14   :  { %p2190_p8 = por %p2189_p7, %p2188_p6 }
  0x16   :  { %p2191_p9 = pnand %p2190_p8, %p2184_p5 }
  0x18   :  { %2194 = shalt.err (!%p2191_p9)
}
  0x19   :  { %27 = dma.hbm_to_vmem [thread:$0]  %s2643_s2, 48, %s25_s29, [#allocation3]  }
  0x1a   :  { %s2203_s12 = scalar_lea.vmem %s48_s7, 8192  ;;  %p2208_p11 = scmp.lt.s32.totalorder %s48_s7, %s48_s7 }
  0x1b   :  { %p2204_p10 = scmp.ne.s32.totalorder %s48_s7, %s2203_s12  ;;  %p2209_p12 = scmp.lt.s32.totalorder %s2203_s12, %s2203_s12 }
  0x1d   :  { %p2210_p13 = por %p2209_p12, %p2208_p11 }
  0x1f   :  { %p2211_p0 = pnand %p2210_p13, %p2204_p10 }
  0x21   :  { %2214 = shalt.err (!%p2211_p0)
}
  0x22   :  { %s2246_s3 = smov 128   ;;  %s2247_s13 = smov 8  }
  0x23   :  { %53 = dma.hbm_to_vmem [thread:$0]  %s2646_s5, 8192, %s48_s7, [#allocation6], %s2246_s3, %s2246_s3, %s2247_s13  }
  0x24   :  { %2235 = dma.done.wait [#allocation3], 48  }
  0x25   :  { %2236 = vsyncadd [#allocation3], 4294967248 }
  0x26   :  { %2237 = dma.done.wait [#allocation6], 38912  }
  0x27   :  { %2238 = vsyncadd [#allocation6], 4294928384  ;;  %v2248_v0 = vmov 0.0   ;;  %v71_v1 = vld [vmem:[%s2642_s1 + $0x20] sm:$0xff]  ;;  %v72_v2 = vld [vmem:[%s2642_s1 + $0x28] sm:$0xff]  ;;  %vm90_vm0 = vcmask 130048  }
  0x28   :  { %167 = vmatprep.mubr.f32.mxu0 %v2248_v0  ;;  %v70_v3 = vld [vmem:[%s2642_s1 + $0x18] sm:$0xff]  ;;  %131 = vmatprep.subr.mxu0 %v71_v1  ;;  %v68_v4 = vld [vmem:[%s2642_s1 + $0x8] sm:$0xff]  ;;  %v69_v5 = vld [vmem:[%s2642_s1 + $0x10] sm:$0xff] }
  0x29   :  { %1882 = vmatprep.subr.mxu1 %v72_v2  ;;  %v67_v6 = vld [vmem:[%s2642_s1] sm:$0xff]  ;;  %132 = vmatpush1.msra.mxu0 %v70_v3  ;;  %v64_v8 = vld [vmem:[%s2641_s0 + $0x8] sm:$0xff]  ;;  %v65_v9 = vld [vmem:[%s2641_s0 + $0x10] sm:$0xff] }
  0x2a   :  { %1883 = vmatpush3.msra.mxu1 %v72_v2  ;;  %v63_v7 = vld [vmem:[%s2641_s0] sm:$0xff]  ;;  %133 = vmatprep.subr.mxu0 %v68_v4  ;;  %v66_v13 = vld [vmem:[%s2641_s0 + $0x18] sm:$0xff]  ;;  %v354_v16 = vld [vmem:[#allocation5 + $0x208] sm:$0xff] }
  0x2b   :  { %1884 = vmatprep.subr.mxu1 %v69_v5  ;;  %134 = vmatpush1.msra.mxu0 %v67_v6  ;;  %v365_v10 = vld [vmem:[#allocation5 + $0x260] sm:$0xff]  ;;  %v364_v11 = vld [vmem:[#allocation5 + $0x258] sm:$0xff]  ;;  %v359_v14 = vld [vmem:[#allocation5 + $0x230] sm:$0xff] }
  0x2c   :  { %1885 = vmatpush3.msra.mxu1 %v69_v5  ;;  %1886 = vmatprep.mubr.msk.f32.mxu1 %vm90_vm0, %v63_v7  ;;  %v360_v12 = vld [vmem:[#allocation5 + $0x238] sm:$0xff]  ;;  %v355_v15 = vld [vmem:[#allocation5 + $0x210] sm:$0xff]  ;;  %v350_v17 = vld [vmem:[#allocation5 + $0x1e8] sm:$0xff] }
  0x2d   :  { %1724 = vmatmul.mubr.msk.f32.vlgmr.msra.gmra.mxu0 %vm90_vm0, %v63_v7  ;;  %1887 = vmatmul.mubr.msk.f32.vlgmr.msra.gmra.mxu1 %vm90_vm0, %v64_v8  ;;  %v349_v18 = vld [vmem:[#allocation5 + $0x1e0] sm:$0xff]  ;;  %v524_v21 = vld [vmem:[#allocation5 + $0x758] sm:$0xff]  ;;  %v519_v25 = vld [vmem:[#allocation5 + $0x730] sm:$0xff] }
  0x2e   :  { %173 = vmatprep.mubr.f32.mxu0 %v2248_v0  ;;  %1889 = vmatprep.mubr.msk.f32.mxu1 %vm90_vm0, %v65_v9  ;;  %v345_v19 = vld [vmem:[#allocation5 + $0x1c0] sm:$0xff]  ;;  %v344_v22 = vld [vmem:[#allocation5 + $0x1b8] sm:$0xff]  ;;  %v339_v26 = vld [vmem:[#allocation5 + $0x190] sm:$0xff] }
  0x2f   :  { %556 = vmatprep.subr.mxu0 %v365_v10  ;;  %v525_v20 = vld [vmem:[#allocation5 + $0x760] sm:$0xff]  ;;  %v520_v23 = vld [vmem:[#allocation5 + $0x738] sm:$0xff]  ;;  %v515_v27 = vld [vmem:[#allocation5 + $0x710] sm:$0xff] }
  0x30   :  { %557 = vmatpush1.msra.mxu0 %v364_v11  ;;  %645 = vmatprep.subr.mxu1 %v525_v20  ;;  %v340_v24 = vld [vmem:[#allocation5 + $0x198] sm:$0xff]  ;;  %v335_v28 = vld [vmem:[#allocation5 + $0x170] sm:$0xff]  ;;  %v514_v29 = vld [vmem:[#allocation5 + $0x708] sm:$0xff] }
  0x31   :  { %1725 = vmatmul.mubr.msk.f32.gmra.mxu0 %vm90_vm0, %v64_v8  ;;  %558 = vmatprep.subr.mxu0 %v360_v12  ;;  %v334_v30 = vld [vmem:[#allocation5 + $0x168] sm:$0xff]  ;;  %v509_v33 = vld [vmem:[#allocation5 + $0x6e0] sm:$0xff]  ;;  %v504_v37 = vld [vmem:[#allocation5 + $0x6b8] sm:$0xff] }
  0x32   :  { %1890 = vmatmul.mubr.msk.f32.gmra.mxu1 %vm90_vm0, %v66_v13  ;;  %179 = vmatprep.mubr.f32.mxu0 %v2248_v0  ;;  %v510_v31 = vld [vmem:[#allocation5 + $0x6e8] sm:$0xff]  ;;  %v329_v34 = vld [vmem:[#allocation5 + $0x140] sm:$0xff]  ;;  %v324_v38 = vld [vmem:[#allocation5 + $0x118] sm:$0xff] }
  0x33   :  { %559 = vmatpush1.msra.mxu0 %v359_v14  ;;  %709 = vmatprep.mubr.f32.mxu1 %v2248_v0  ;;  %v330_v32 = vld [vmem:[#allocation5 + $0x148] sm:$0xff]  ;;  %v505_v35 = vld [vmem:[#allocation5 + $0x6c0] sm:$0xff]  ;;  %v500_v39 = vld [vmem:[#allocation5 + $0x698] sm:$0xff] }
  0x34   :  { %560 = vmatprep.subr.mxu0 %v355_v15  ;;  %646 = vmatpush1.msra.mxu1 %v524_v21  ;;  %v325_v36 = vld [vmem:[#allocation5 + $0x120] sm:$0xff]  ;;  %v320_v40 = vld [vmem:[#allocation5 + $0xf8] sm:$0xff]  ;;  %v499_v41 = vld [vmem:[#allocation5 + $0x690] sm:$0xff] }
  0x35   :  { %1726 = vmatmul.mubr.msk.f32.gmra.mxu0 %vm90_vm0, %v65_v9  ;;  %647 = vmatprep.subr.mxu1 %v520_v23  ;;  %v319_v42 = vld [vmem:[#allocation5 + $0xf0] sm:$0xff]  ;;  %v494_v45 = vld [vmem:[#allocation5 + $0x668] sm:$0xff]  ;;  %v489_v49 = vld [vmem:[#allocation5 + $0x640] sm:$0xff] }
  0x36   :  { %185 = vmatprep.mubr.f32.mxu0 %v2248_v0  ;;  %561 = vmatpush1.msra.mxu0 %v354_v16  ;;  %v495_v43 = vld [vmem:[#allocation5 + $0x670] sm:$0xff]  ;;  %v314_v46 = vld [vmem:[#allocation5 + $0xc8] sm:$0xff]  ;;  %v309_v50 = vld [vmem:[#allocation5 + $0xa0] sm:$0xff] }
  0x37   :  { %562 = vmatprep.subr.mxu0 %v350_v17  ;;  %648 = vmatpush1.msra.mxu1 %v519_v25  ;;  %v315_v44 = vld [vmem:[#allocation5 + $0xd0] sm:$0xff]  ;;  %v490_v47 = vld [vmem:[#allocation5 + $0x648] sm:$0xff]  ;;  %v485_v51 = vld [vmem:[#allocation5 + $0x620] sm:$0xff] }
  0x38   :  { %563 = vmatpush1.msra.mxu0 %v349_v18  ;;  %649 = vmatprep.subr.mxu1 %v515_v27  ;;  %v310_v48 = vld [vmem:[#allocation5 + $0xa8] sm:$0xff]  ;;  %v305_v52 = vld [vmem:[#allocation5 + $0x80] sm:$0xff]  ;;  %v484_v53 = vld [vmem:[#allocation5 + $0x618] sm:$0xff] }
  0x39   :  { %1727 = vmatmul.mubr.msk.f32.gmra.mxu0 %vm90_vm0, %v66_v13  ;;  %564 = vmatprep.subr.mxu0 %v345_v19  ;;  %v304_v54 = vld [vmem:[#allocation5 + $0x78] sm:$0xff]  ;;  %v479_v57 = vld [vmem:[#allocation5 + $0x5f0] sm:$0xff]  ;;  %v474_v61 = vld [vmem:[#allocation5 + $0x5c8] sm:$0xff] }
  0x3a   :  { %565 = vmatpush1.msra.mxu0 %v344_v22  ;;  %650 = vmatpush1.msra.mxu1 %v514_v29  ;;  %v480_v55 = vld [vmem:[#allocation5 + $0x5f8] sm:$0xff]  ;;  %v299_v58 = vld [vmem:[#allocation5 + $0x50] sm:$0xff]  ;;  %v294_v62 = vld [vmem:[#allocation5 + $0x28] sm:$0xff] }
  0x3b   :  { %566 = vmatprep.subr.mxu0 %v340_v24  ;;  %651 = vmatprep.subr.mxu1 %v510_v31  ;;  %v300_v56 = vld [vmem:[#allocation5 + $0x58] sm:$0xff]  ;;  %v475_v59 = vld [vmem:[#allocation5 + $0x5d0] sm:$0xff]  ;;  %v470_v63 = vld [vmem:[#allocation5 + $0x5a8] sm:$0xff] }
  0x3c   :  { %567 = vmatpush1.msra.mxu0 %v339_v26  ;;  %652 = vmatpush1.msra.mxu1 %v509_v33  ;;  %v295_v60 = vld [vmem:[#allocation5 + $0x30] sm:$0xff]  ;;  %v290_v1 = vld [vmem:[#allocation5 + $0x8] sm:$0xff]  ;;  %v469_v2 = vld [vmem:[#allocation5 + $0x5a0] sm:$0xff] }
  0x3d   :  { %568 = vmatprep.subr.mxu0 %v335_v28  ;;  %653 = vmatprep.subr.mxu1 %v505_v35  ;;  %v289_v3 = vld [vmem:[#allocation5] sm:$0xff]  ;;  %v464_v6 = vld [vmem:[#allocation5 + $0x578] sm:$0xff]  ;;  %v439_v9 = vld [vmem:[#allocation5 + $0x4b0] sm:$0xff] }
  0x3e   :  { %569 = vmatpush1.msra.mxu0 %v334_v30  ;;  %654 = vmatpush1.msra.mxu1 %v504_v37  ;;  %v465_v4 = vld [vmem:[#allocation5 + $0x580] sm:$0xff]  ;;  %v444_v7 = vld [vmem:[#allocation5 + $0x4d8] sm:$0xff]  ;;  %v435_v10 = vld [vmem:[#allocation5 + $0x490] sm:$0xff] }
  0x3f   :  { %570 = vmatprep.subr.mxu0 %v330_v32  ;;  %655 = vmatprep.subr.mxu1 %v500_v39  ;;  %v445_v5 = vld [vmem:[#allocation5 + $0x4e0] sm:$0xff]  ;;  %v440_v8 = vld [vmem:[#allocation5 + $0x4b8] sm:$0xff]  ;;  %v434_v11 = vld [vmem:[#allocation5 + $0x488] sm:$0xff] }
  0x40   :  { %571 = vmatpush1.msra.mxu0 %v329_v34  ;;  %656 = vmatpush1.msra.mxu1 %v499_v41  ;;  %v430_v12 = vld [vmem:[#allocation5 + $0x468] sm:$0xff]  ;;  %v429_v13 = vld [vmem:[#allocation5 + $0x460] sm:$0xff]  ;;  %v424_v15 = vld [vmem:[#allocation5 + $0x438] sm:$0xff] }
  0x41   :  { %572 = vmatprep.subr.mxu0 %v325_v36  ;;  %657 = vmatprep.subr.mxu1 %v495_v43  ;;  %v425_v14 = vld [vmem:[#allocation5 + $0x440] sm:$0xff]  ;;  %v420_v16 = vld [vmem:[#allocation5 + $0x418] sm:$0xff]  ;;  %v419_v17 = vld [vmem:[#allocation5 + $0x410] sm:$0xff] }
  0x42   :  { %573 = vmatpush1.msra.mxu0 %v324_v38  ;;  %658 = vmatpush1.msra.mxu1 %v494_v45  ;;  %v415_v18 = vld [vmem:[#allocation5 + $0x3f0] sm:$0xff]  ;;  %v414_v19 = vld [vmem:[#allocation5 + $0x3e8] sm:$0xff]  ;;  %v409_v21 = vld [vmem:[#allocation5 + $0x3c0] sm:$0xff] }
  0x43   :  { %574 = vmatprep.subr.mxu0 %v320_v40  ;;  %659 = vmatprep.subr.mxu1 %v490_v47  ;;  %v410_v20 = vld [vmem:[#allocation5 + $0x3c8] sm:$0xff]  ;;  %v405_v22 = vld [vmem:[#allocation5 + $0x3a0] sm:$0xff]  ;;  %v404_v23 = vld [vmem:[#allocation5 + $0x398] sm:$0xff] }
  0x44   :  { %575 = vmatpush1.msra.mxu0 %v319_v42  ;;  %660 = vmatpush1.msra.mxu1 %v489_v49  ;;  %v400_v24 = vld [vmem:[#allocation5 + $0x378] sm:$0xff]  ;;  %v399_v25 = vld [vmem:[#allocation5 + $0x370] sm:$0xff]  ;;  %v394_v27 = vld [vmem:[#allocation5 + $0x348] sm:$0xff] }
  0x45   :  { %576 = vmatprep.subr.mxu0 %v315_v44  ;;  %661 = vmatprep.subr.mxu1 %v485_v51  ;;  %v395_v26 = vld [vmem:[#allocation5 + $0x350] sm:$0xff]  ;;  %v390_v28 = vld [vmem:[#allocation5 + $0x328] sm:$0xff]  ;;  %v389_v29 = vld [vmem:[#allocation5 + $0x320] sm:$0xff] }
  0x46   :  { %577 = vmatpush1.msra.mxu0 %v314_v46  ;;  %662 = vmatpush1.msra.mxu1 %v484_v53  ;;  %v385_v30 = vld [vmem:[#allocation5 + $0x300] sm:$0xff]  ;;  %v384_v31 = vld [vmem:[#allocation5 + $0x2f8] sm:$0xff]  ;;  %v459_v34 = vld [vmem:[#allocation5 + $0x550] sm:$0xff]  ;;  %v75_v46 = vlaneseq }
  0x47   :  { %578 = vmatprep.subr.mxu0 %v310_v48  ;;  %663 = vmatprep.subr.mxu1 %v480_v55  ;;  %v460_v32 = vld [vmem:[#allocation5 + $0x558] sm:$0xff]  ;;  %v379_v35 = vld [vmem:[#allocation5 + $0x2d0] sm:$0xff]  ;;  %v454_v38 = vld [vmem:[#allocation5 + $0x528] sm:$0xff] }
  0x48   :  { %579 = vmatpush1.msra.mxu0 %v309_v50  ;;  %664 = vmatpush1.msra.mxu1 %v479_v57  ;;  %v380_v33 = vld [vmem:[#allocation5 + $0x2d8] sm:$0xff]  ;;  %v455_v36 = vld [vmem:[#allocation5 + $0x530] sm:$0xff]  ;;  %v374_v39 = vld [vmem:[#allocation5 + $0x2a8] sm:$0xff]  ;;  %v2340_v47 = vshrl.u32 %v75_v46, 7 }
  0x49   :  { %580 = vmatprep.subr.mxu0 %v305_v52  ;;  %665 = vmatprep.subr.mxu1 %v475_v59  ;;  %v375_v37 = vld [vmem:[#allocation5 + $0x2b0] sm:$0xff]  ;;  %v450_v40 = vld [vmem:[#allocation5 + $0x508] sm:$0xff]  ;;  %v449_v42 = vld [vmem:[#allocation5 + $0x500] sm:$0xff] }
  0x4a   :  { %581 = vmatpush1.msra.mxu0 %v304_v54  ;;  %666 = vmatpush1.msra.mxu1 %v474_v61  ;;  %v370_v41 = vld [vmem:[#allocation5 + $0x288] sm:$0xff]  ;;  %v369_v43 = vld [vmem:[#allocation5 + $0x280] sm:$0xff]  ;;  %v367_v44 = vld [vmem:[#allocation5 + $0x270] sm:$0xff]  ;;  %v77_v48 = vsub.s32 0, %v2340_v47  ;;  %v81_v49 = vsub.s32 1, %v2340_v47  ;;  %v85_v52 = vsub.s32 2, %v2340_v47 }
  0x4b   :  { %582 = vmatprep.subr.mxu0 %v300_v56  ;;  %667 = vmatprep.subr.mxu1 %v470_v63  ;;  %v527_v45 = vld [vmem:[#allocation5 + $0x770] sm:$0xff]  ;;  %v73_v50 = vld [vmem:[#allocation2] sm:$0x7]  ;;  %v326_v46 = vld [vmem:[#allocation5 + $0x128] sm:$0xff] }
  0x4c   :  { %583 = vmatpush1.msra.mxu0 %v299_v58  ;;  %668 = vmatpush1.msra.mxu1 %v469_v2  ;;  %v2346_v51 = vrot.slane %v73_v50, %v77_v48  ;;  %v2351_v53 = vrot.slane %v73_v50, %v81_v49  ;;  %v2356_v57 = vrot.slane %v73_v50, %v85_v52  ;;  %v487_v50 = vld [vmem:[#allocation5 + $0x630] sm:$0xff] }
  0x4d   :  { %584 = vmatprep.subr.mxu0 %v295_v60  ;;  %669 = vmatprep.subr.mxu1 %v465_v4  ;;  %v366_v4 = vld [vmem:[#allocation5 + $0x268] sm:$0xff] }
  0x4e   :  { %585 = vmatpush1.msra.mxu0 %v294_v62  ;;  %670 = vmatpush1.msra.mxu1 %v464_v6 }
  0x4f   :  { %586 = vmatprep.subr.mxu0 %v290_v1  ;;  %671 = vmatprep.subr.mxu1 %v460_v32  ;;  %v337_v32 = vld [vmem:[#allocation5 + $0x180] sm:$0xff] }
  0x50   :  { %587 = vmatpush1.msra.mxu0 %v289_v3  ;;  %672 = vmatpush1.msra.mxu1 %v459_v34  ;;  %v501_v34 = vld [vmem:[#allocation5 + $0x6a0] sm:$0xff] }
  0x51   :  { %588 = vmatprep.subr.mxu0 %v445_v5  ;;  %673 = vmatprep.subr.mxu1 %v455_v36  ;;  %v526_v5 = vld [vmem:[#allocation5 + $0x768] sm:$0xff]  ;;  %v497_v36 = vld [vmem:[#allocation5 + $0x680] sm:$0xff] }
  0x52   :  { %589 = vmatpush2.msra.mxu0 %v444_v7  ;;  %674 = vmatpush1.msra.mxu1 %v454_v38 }
  0x53   :  { %590 = vmatprep.subr.mxu0 %v440_v8  ;;  %675 = vmatprep.subr.mxu1 %v450_v40  ;;  %v331_v40 = vld [vmem:[#allocation5 + $0x150] sm:$0xff] }
  0x54   :  { %591 = vmatpush2.msra.mxu0 %v439_v9  ;;  %676 = vmatpush1.msra.mxu1 %v449_v42  ;;  %v362_v9 = vld [vmem:[#allocation5 + $0x248] sm:$0xff]  ;;  %v327_v42 = vld [vmem:[#allocation5 + $0x130] sm:$0xff] }
  0x55   :  { %592 = vmatprep.subr.mxu0 %v435_v10  ;;  %734 = vmatprep.subr.mxu1 %v367_v44  ;;  %v522_v10 = vld [vmem:[#allocation5 + $0x748] sm:$0xff] }
  0x56   :  { %593 = vmatpush2.msra.mxu0 %v434_v11  ;;  %v361_v11 = vld [vmem:[#allocation5 + $0x240] sm:$0xff] }
  0x57   :  { %594 = vmatprep.subr.mxu0 %v430_v12 }
  0x58   :  { %595 = vmatpush2.msra.mxu0 %v429_v13  ;;  %v357_v13 = vld [vmem:[#allocation5 + $0x220] sm:$0xff] }
  0x59   :  { %596 = vmatprep.subr.mxu0 %v425_v14  ;;  %v521_v14 = vld [vmem:[#allocation5 + $0x740] sm:$0xff] }
  0x5a   :  { %597 = vmatpush2.msra.mxu0 %v424_v15 }
  0x5b   :  { %598 = vmatprep.subr.mxu0 %v420_v16 }
  0x5c   :  { %599 = vmatpush2.msra.mxu0 %v419_v17  ;;  %v356_v17 = vld [vmem:[#allocation5 + $0x218] sm:$0xff] }
  0x5d   :  { %600 = vmatprep.subr.mxu0 %v415_v18  ;;  %v517_v18 = vld [vmem:[#allocation5 + $0x720] sm:$0xff] }
  0x5e   :  { %601 = vmatpush2.msra.mxu0 %v414_v19  ;;  %v352_v19 = vld [vmem:[#allocation5 + $0x1f8] sm:$0xff] }
  0x5f   :  { %602 = vmatprep.subr.mxu0 %v410_v20  ;;  %v516_v20 = vld [vmem:[#allocation5 + $0x718] sm:$0xff] }
  0x60   :  { %603 = vmatpush2.msra.mxu0 %v409_v21  ;;  %v351_v21 = vld [vmem:[#allocation5 + $0x1f0] sm:$0xff] }
  0x61   :  { %604 = vmatprep.subr.mxu0 %v405_v22  ;;  %v512_v22 = vld [vmem:[#allocation5 + $0x6f8] sm:$0xff] }
  0x62   :  { %605 = vmatpush2.msra.mxu0 %v404_v23  ;;  %v347_v23 = vld [vmem:[#allocation5 + $0x1d0] sm:$0xff] }
  0x63   :  { %606 = vmatprep.subr.mxu0 %v400_v24  ;;  %v511_v24 = vld [vmem:[#allocation5 + $0x6f0] sm:$0xff] }
  0x64   :  { %607 = vmatpush2.msra.mxu0 %v399_v25  ;;  %v346_v25 = vld [vmem:[#allocation5 + $0x1c8] sm:$0xff] }
  0x65   :  { %608 = vmatprep.subr.mxu0 %v395_v26  ;;  %v507_v26 = vld [vmem:[#allocation5 + $0x6d0] sm:$0xff] }
  0x66   :  { %609 = vmatpush2.msra.mxu0 %v394_v27  ;;  %v342_v27 = vld [vmem:[#allocation5 + $0x1a8] sm:$0xff] }
  0x67   :  { %610 = vmatprep.subr.mxu0 %v390_v28 }
  0x68   :  { %611 = vmatpush2.msra.mxu0 %v389_v29  ;;  %v506_v29 = vld [vmem:[#allocation5 + $0x6c8] sm:$0xff] }
  0x69   :  { %612 = vmatprep.subr.mxu0 %v385_v30  ;;  %v341_v30 = vld [vmem:[#allocation5 + $0x1a0] sm:$0xff] }
  0x6a   :  { %613 = vmatpush2.msra.mxu0 %v384_v31  ;;  %v502_v31 = vld [vmem:[#allocation5 + $0x6a8] sm:$0xff] }
  0x6b   :  { %614 = vmatprep.subr.mxu0 %v380_v33 }
  0x6c   :  { %615 = vmatpush2.msra.mxu0 %v379_v35  ;;  %v336_v35 = vld [vmem:[#allocation5 + $0x178] sm:$0xff] }
  0x6d   :  { %616 = vmatprep.subr.mxu0 %v375_v37  ;;  %v332_v37 = vld [vmem:[#allocation5 + $0x158] sm:$0xff] }
  0x6e   :  { %617 = vmatpush2.msra.mxu0 %v374_v39  ;;  %v496_v39 = vld [vmem:[#allocation5 + $0x678] sm:$0xff] }
  0x6f   :  { %618 = vmatprep.subr.mxu0 %v370_v41  ;;  %v492_v41 = vld [vmem:[#allocation5 + $0x658] sm:$0xff] }
  0x70   :  { %619 = vmatpush2.msra.mxu0 %v369_v43 }
  0x71   :  { %823 = vmatprep.subr.mxu0 %v527_v45  ;;  %v491_v45 = vld [vmem:[#allocation5 + $0x650] sm:$0xff] }
  0xed   :  { %v169_v54 = vpop.f32.mrf.mxu0  ;;  %v1888_v56 = vpop.f32.mrf.mxu1 }
  0xee   :  { %v170_v55 = vadd.f32 %v169_v54, %v2346_v51  ;;  %v264_v6 = vadd.f32 %v1888_v56, %v2356_v57  ;;  %v322_v54 = vld [vmem:[#allocation5 + $0x108] sm:$0xff]  ;;  %v321_v56 = vld [vmem:[#allocation5 + $0x100] sm:$0xff] }
  0xef   :  { %v171_v58 = vpop.f32.mrf.mxu0  ;;  %v258_v60 = vpop.f32.mrf.mxu1 }
  0xf0   :  { %v172_v59 = vadd.f32 %v171_v58, %v2351_v53  ;;  %v2359_v61 = vmax.f32 %v170_v55, 0.0  ;;  %v259_v62 = vadd.f32 %v258_v60, %v2356_v57  ;;  %v2374_v15 = vmax.f32 %v264_v6, 0.0  ;;  %v486_v55 = vld [vmem:[#allocation5 + $0x628] sm:$0xff] }
  0xf1   :  { %v175_v63 = vpop.f32.mrf.mxu0 }
  0xf2   :  { %v2362_v1 = vmax.f32 %v172_v59, 0.0  ;;  %v2364_v2 = vmax.f32 %v259_v62, 0.0  ;;  %v176_v7 = vadd.f32 %v175_v63, %v2346_v51  ;;  %v1891_v28 = vpop.f32.mrf.mxu1  ;;  %v482_v59 = vld [vmem:[#allocation5 + $0x608] sm:$0xff]  ;;  %v317_v63 = vld [vmem:[#allocation5 + $0xe0] sm:$0xff] }
  0xf3   :  { %v177_v3 = vpop.f32.mrf.mxu0 }
  0xf4   :  { %v178_v8 = vadd.f32 %v177_v3, %v2351_v53  ;;  %620 = vmatprep.mubr.f32.mxu0 %v2362_v1  ;;  %710 = vmatmul.mubr.f32.vlgmr.msra.gmra.mxu1 %v2364_v2  ;;  %v2376_v16 = vmax.f32 %v176_v7, 0.0  ;;  %v268_v38 = vpop.f32.mrf.mxu1  ;;  %v481_v3 = vld [vmem:[#allocation5 + $0x600] sm:$0xff]  ;;  %v316_v7 = vld [vmem:[#allocation5 + $0xd8] sm:$0xff] }
  0xf5   :  { %621 = vmatmul.mubr.f32.vlgmr.msra.gmra.mxu0 %v2359_v61  ;;  %735 = vmatpush1.msra.mxu1 %v366_v4  ;;  %v181_v33 = vpop.f32.mrf.mxu0  ;;  %v269_v44 = vadd.f32 %v268_v38, %v2356_v57  ;;  %v274_v4 = vadd.f32 %v1891_v28, %v2356_v57  ;;  %v311_v57 = vld [vmem:[#allocation5 + $0xb0] sm:$0xff]  ;;  %v297_v28 = vld [vmem:[#allocation5 + $0x40] sm:$0xff]  ;;  %v446_v38 = vld [vmem:[#allocation5 + $0x4e8] sm:$0xff] }
  0xf6   :  { %v2372_v12 = vmax.f32 %v178_v8, 0.0  ;;  %824 = vmatpush1.msra.mxu0 %v526_v5  ;;  %736 = vmatprep.subr.mxu1 %v362_v9  ;;  %v477_v5 = vld [vmem:[#allocation5 + $0x5e0] sm:$0xff]  ;;  %v182_v6 = vadd.f32 %v181_v33, %v2346_v51  ;;  %v476_v8 = vld [vmem:[#allocation5 + $0x5d8] sm:$0xff] }
  0xf7   :  { %825 = vmatprep.subr.mxu0 %v522_v10  ;;  %737 = vmatpush1.msra.mxu1 %v361_v11  ;;  %v183_v43 = vpop.f32.mrf.mxu0  ;;  %v2384_v62 = vmax.f32 %v269_v44, 0.0  ;;  %v312_v10 = vld [vmem:[#allocation5 + $0xb8] sm:$0xff]  ;;  %v437_v44 = vld [vmem:[#allocation5 + $0x4a0] sm:$0xff] }
  0xf8   :  { %715 = vmatprep.mubr.f32.mxu1 %v2248_v0  ;;  %738 = vmatprep.subr.mxu1 %v357_v13  ;;  %v184_v58 = vadd.f32 %v183_v43, %v2351_v53  ;;  %v472_v13 = vld [vmem:[#allocation5 + $0x5b8] sm:$0xff]  ;;  %v443_v43 = vld [vmem:[#allocation5 + $0x4d0] sm:$0xff] }
  0xf9   :  { %826 = vmatpush1.msra.mxu0 %v521_v14  ;;  %626 = vmatprep.mubr.f32.mxu0 %v2372_v12  ;;  %v187_v60 = vpop.f32.mrf.mxu0  ;;  %v2392_v14 = vmax.f32 %v274_v4, 0.0  ;;  %v456_v33 = vld [vmem:[#allocation5 + $0x538] sm:$0xff]  ;;  %v422_v4 = vld [vmem:[#allocation5 + $0x428] sm:$0xff] }
  0xfa   :  { %716 = vmatmul.mubr.f32.gmra.mxu1 %v2374_v15  ;;  %827 = vmatprep.subr.mxu0 %v517_v18  ;;  %v2389_v9 = vmax.f32 %v184_v58, 0.0  ;;  %v2394_v18 = vmax.f32 %v182_v6, 0.0  ;;  %v433_v58 = vld [vmem:[#allocation5 + $0x480] sm:$0xff] }
  0xfb   :  { %739 = vmatpush1.msra.mxu1 %v356_v17  ;;  %627 = vmatmul.mubr.f32.gmra.mxu0 %v2376_v16  ;;  %v189_v11 = vpop.f32.mrf.mxu0  ;;  %v307_v17 = vld [vmem:[#allocation5 + $0x90] sm:$0xff]  ;;  %v421_v6 = vld [vmem:[#allocation5 + $0x420] sm:$0xff] }
  0xfc   :  { %740 = vmatprep.subr.mxu1 %v352_v19  ;;  %828 = vmatpush1.msra.mxu0 %v516_v20  ;;  %v190_v19 = vadd.f32 %v189_v11, %v2351_v53  ;;  %v471_v20 = vld [vmem:[#allocation5 + $0x5b0] sm:$0xff]  ;;  %v301_v53 = vld [vmem:[#allocation5 + $0x60] sm:$0xff]  ;;  %v416_v11 = vld [vmem:[#allocation5 + $0x3f8] sm:$0xff] }
  0xfd   :  { %741 = vmatpush1.msra.mxu1 %v351_v21  ;;  %829 = vmatprep.subr.mxu0 %v512_v22  ;;  %v306_v21 = vld [vmem:[#allocation5 + $0x88] sm:$0xff]  ;;  %v188_v22 = vadd.f32 %v187_v60, %v2346_v51  ;;  %v353_v60 = vld [vmem:[#allocation5 + $0x200] sm:$0xff] }
  0xfe   :  { %742 = vmatprep.subr.mxu1 %v347_v23  ;;  %830 = vmatpush1.msra.mxu0 %v511_v24  ;;  %v467_v23 = vld [vmem:[#allocation5 + $0x590] sm:$0xff]  ;;  %v302_v24 = vld [vmem:[#allocation5 + $0x68] sm:$0xff] }
  0xff   :  { %743 = vmatpush1.msra.mxu1 %v346_v25  ;;  %831 = vmatprep.subr.mxu0 %v507_v26  ;;  %v466_v25 = vld [vmem:[#allocation5 + $0x588] sm:$0xff]  ;;  %v2401_v26 = vmax.f32 %v190_v19, 0.0  ;;  %v2404_v51 = vmax.f32 %v188_v22, 0.0  ;;  %v411_v19 = vld [vmem:[#allocation5 + $0x3d0] sm:$0xff]  ;;  %v333_v22 = vld [vmem:[#allocation5 + $0x160] sm:$0xff] }
 0x100   :  { %744 = vmatprep.subr.mxu1 %v342_v27  ;;  %832 = vmatpush1.msra.mxu0 %v506_v29  ;;  %v462_v27 = vld [vmem:[#allocation5 + $0x568] sm:$0xff]  ;;  %v461_v29 = vld [vmem:[#allocation5 + $0x560] sm:$0xff] }
 0x101   :  { %745 = vmatpush1.msra.mxu1 %v341_v30  ;;  %833 = vmatprep.subr.mxu0 %v502_v31  ;;  %v296_v30 = vld [vmem:[#allocation5 + $0x38] sm:$0xff]  ;;  %v457_v31 = vld [vmem:[#allocation5 + $0x540] sm:$0xff] }
 0x102   :  { %746 = vmatprep.subr.mxu1 %v337_v32  ;;  %834 = vmatpush1.msra.mxu0 %v501_v34  ;;  %v292_v32 = vld [vmem:[#allocation5 + $0x18] sm:$0xff]  ;;  %v291_v34 = vld [vmem:[#allocation5 + $0x10] sm:$0xff] }
 0x103   :  { %747 = vmatpush1.msra.mxu1 %v336_v35  ;;  %835 = vmatprep.subr.mxu0 %v497_v36  ;;  %v452_v35 = vld [vmem:[#allocation5 + $0x518] sm:$0xff]  ;;  %v447_v36 = vld [vmem:[#allocation5 + $0x4f0] sm:$0xff] }
 0x104   :  { %748 = vmatprep.subr.mxu1 %v332_v37  ;;  %836 = vmatpush1.msra.mxu0 %v496_v39  ;;  %v451_v37 = vld [vmem:[#allocation5 + $0x510] sm:$0xff]  ;;  %v448_v39 = vld [vmem:[#allocation5 + $0x4f8] sm:$0xff] }
 0x105   :  { %749 = vmatpush1.msra.mxu1 %v331_v40  ;;  %837 = vmatprep.subr.mxu0 %v492_v41  ;;  %v442_v40 = vld [vmem:[#allocation5 + $0x4c8] sm:$0xff]  ;;  %v368_v41 = vld [vmem:[#allocation5 + $0x278] sm:$0xff] }
 0x106   :  { %750 = vmatprep.subr.mxu1 %v327_v42  ;;  %838 = vmatpush1.msra.mxu0 %v491_v45  ;;  %v441_v42 = vld [vmem:[#allocation5 + $0x4c0] sm:$0xff]  ;;  %v363_v45 = vld [vmem:[#allocation5 + $0x250] sm:$0xff] }
 0x107   :  { %751 = vmatpush1.msra.mxu1 %v326_v46  ;;  %839 = vmatprep.subr.mxu0 %v487_v50  ;;  %v436_v46 = vld [vmem:[#allocation5 + $0x498] sm:$0xff]  ;;  %v438_v50 = vld [vmem:[#allocation5 + $0x4a8] sm:$0xff] }
 0x108   :  { %752 = vmatprep.subr.mxu1 %v322_v54  ;;  %840 = vmatpush1.msra.mxu0 %v486_v55  ;;  %v432_v54 = vld [vmem:[#allocation5 + $0x478] sm:$0xff]  ;;  %v358_v55 = vld [vmem:[#allocation5 + $0x228] sm:$0xff] }
 0x109   :  { %753 = vmatpush1.msra.mxu1 %v321_v56  ;;  %841 = vmatprep.subr.mxu0 %v482_v59  ;;  %v431_v56 = vld [vmem:[#allocation5 + $0x470] sm:$0xff] }
 0x10a   :  { %721 = vmatprep.mubr.f32.mxu1 %v2248_v0  ;;  %754 = vmatprep.subr.mxu1 %v317_v63  ;;  %v427_v59 = vld [vmem:[#allocation5 + $0x450] sm:$0xff]  ;;  %v426_v63 = vld [vmem:[#allocation5 + $0x448] sm:$0xff] }
 0x10b   :  { %842 = vmatpush1.msra.mxu0 %v481_v3  ;;  %722 = vmatmul.mubr.f32.gmra.mxu1 %v2384_v62  ;;  %v428_v3 = vld [vmem:[#allocation5 + $0x458] sm:$0xff] }
 0x10c   :  { %843 = vmatprep.subr.mxu0 %v477_v5  ;;  %755 = vmatpush1.msra.mxu1 %v316_v7  ;;  %v348_v5 = vld [vmem:[#allocation5 + $0x1d8] sm:$0xff]  ;;  %v423_v7 = vld [vmem:[#allocation5 + $0x430] sm:$0xff] }
 0x10d   :  { %844 = vmatpush1.msra.mxu0 %v476_v8  ;;  %756 = vmatprep.subr.mxu1 %v312_v10  ;;  %v417_v8 = vld [vmem:[#allocation5 + $0x400] sm:$0xff]  ;;  %v343_v10 = vld [vmem:[#allocation5 + $0x1b0] sm:$0xff] }
 0x10e   :  { %845 = vmatprep.subr.mxu0 %v472_v13  ;;  %757 = vmatpush1.msra.mxu1 %v311_v57  ;;  %v418_v13 = vld [vmem:[#allocation5 + $0x408] sm:$0xff]  ;;  %v412_v57 = vld [vmem:[#allocation5 + $0x3d8] sm:$0xff] }
 0x10f   :  { %632 = vmatprep.mubr.f32.mxu0 %v2389_v9  ;;  %727 = vmatprep.mubr.f32.mxu1 %v2248_v0 }
 0x110   :  { %758 = vmatprep.subr.mxu1 %v307_v17  ;;  %846 = vmatpush1.msra.mxu0 %v471_v20  ;;  %v338_v17 = vld [vmem:[#allocation5 + $0x188] sm:$0xff]  ;;  %v413_v20 = vld [vmem:[#allocation5 + $0x3e0] sm:$0xff] }
 0x111   :  { %728 = vmatmul.mubr.f32.gmra.mxu1 %v2392_v14  ;;  %633 = vmatmul.mubr.f32.gmra.mxu0 %v2394_v18 }
 0x112   :  { %759 = vmatpush1.msra.mxu1 %v306_v21  ;;  %847 = vmatprep.subr.mxu0 %v467_v23  ;;  %v407_v21 = vld [vmem:[#allocation5 + $0x3b0] sm:$0xff]  ;;  %v406_v23 = vld [vmem:[#allocation5 + $0x3a8] sm:$0xff] }
 0x113   :  { %760 = vmatprep.subr.mxu1 %v302_v24  ;;  %798 = vmatprep.mubr.f32.mxu1 %v2362_v1  ;;  %v408_v24 = vld [vmem:[#allocation5 + $0x3b8] sm:$0xff] }
 0x114   :  { %848 = vmatpush1.msra.mxu0 %v466_v25  ;;  %761 = vmatpush1.msra.mxu1 %v301_v53  ;;  %v402_v25 = vld [vmem:[#allocation5 + $0x388] sm:$0xff]  ;;  %v401_v53 = vld [vmem:[#allocation5 + $0x380] sm:$0xff] }
 0x115   :  { %849 = vmatprep.subr.mxu0 %v462_v27  ;;  %638 = vmatprep.mubr.f32.mxu0 %v2401_v26  ;;  %v403_v27 = vld [vmem:[#allocation5 + $0x390] sm:$0xff] }
 0x116   :  { %762 = vmatprep.subr.mxu1 %v297_v28  ;;  %850 = vmatpush1.msra.mxu0 %v461_v29  ;;  %v397_v28 = vld [vmem:[#allocation5 + $0x360] sm:$0xff]  ;;  %v323_v29 = vld [vmem:[#allocation5 + $0x110] sm:$0xff] }
 0x117   :  { %763 = vmatpush1.msra.mxu1 %v296_v30  ;;  %639 = vmatmul.mubr.f32.gmra.mxu0 %v2404_v51  ;;  %v396_v30 = vld [vmem:[#allocation5 + $0x358] sm:$0xff] }
 0x118   :  { %851 = vmatprep.subr.mxu0 %v457_v31  ;;  %764 = vmatprep.subr.mxu1 %v292_v32  ;;  %v398_v31 = vld [vmem:[#allocation5 + $0x368] sm:$0xff]  ;;  %v392_v32 = vld [vmem:[#allocation5 + $0x338] sm:$0xff] }
 0x119   :  { %852 = vmatpush1.msra.mxu0 %v456_v33  ;;  %765 = vmatpush1.msra.mxu1 %v291_v34  ;;  %v391_v33 = vld [vmem:[#allocation5 + $0x330] sm:$0xff]  ;;  %v393_v34 = vld [vmem:[#allocation5 + $0x340] sm:$0xff] }
 0x11a   :  { %853 = vmatprep.subr.mxu0 %v452_v35  ;;  %766 = vmatprep.subr.mxu1 %v447_v36  ;;  %v387_v35 = vld [vmem:[#allocation5 + $0x310] sm:$0xff]  ;;  %v313_v36 = vld [vmem:[#allocation5 + $0xc0] sm:$0xff] }
 0x11b   :  { %854 = vmatpush1.msra.mxu0 %v451_v37  ;;  %887 = vmatprep.mubr.f32.mxu0 %v2248_v0  ;;  %v386_v37 = vld [vmem:[#allocation5 + $0x308] sm:$0xff] }
 0x11c   :  { %767 = vmatpush2.msra.mxu1 %v446_v38  ;;  %888 = vmatmul.mubr.f32.vlgmr.msra.gmra.mxu0 %v2364_v2  ;;  %v388_v38 = vld [vmem:[#allocation5 + $0x318] sm:$0xff] }
 0x11d   :  { %1738 = vmatprep.subr.mxu0 %v448_v39  ;;  %768 = vmatprep.subr.mxu1 %v442_v40  ;;  %v382_v39 = vld [vmem:[#allocation5 + $0x2e8] sm:$0xff]  ;;  %v308_v40 = vld [vmem:[#allocation5 + $0x98] sm:$0xff] }
 0x11e   :  { %1739 = vmatpush3.msra.mxu0 %v368_v41  ;;  %769 = vmatpush2.msra.mxu1 %v441_v42  ;;  %v381_v41 = vld [vmem:[#allocation5 + $0x2e0] sm:$0xff]  ;;  %v383_v42 = vld [vmem:[#allocation5 + $0x2f0] sm:$0xff] }
 0x11f   :  { %1740 = vmatprep.subr.mxu0 %v443_v43  ;;  %770 = vmatprep.subr.mxu1 %v437_v44  ;;  %v377_v43 = vld [vmem:[#allocation5 + $0x2c0] sm:$0xff]  ;;  %v303_v44 = vld [vmem:[#allocation5 + $0x70] sm:$0xff] }
 0x120   :  { %893 = vmatprep.mubr.f32.mxu0 %v2248_v0  ;;  %1741 = vmatpush3.msra.mxu0 %v363_v45  ;;  %v376_v45 = vld [vmem:[#allocation5 + $0x2b8] sm:$0xff] }
 0x121   :  { %771 = vmatpush2.msra.mxu1 %v436_v46  ;;  %894 = vmatmul.mubr.f32.gmra.mxu0 %v2374_v15  ;;  %v378_v46 = vld [vmem:[#allocation5 + $0x2c8] sm:$0xff] }
 0x122   :  { %1742 = vmatprep.subr.mxu0 %v438_v50  ;;  %772 = vmatprep.subr.mxu1 %v432_v54  ;;  %v372_v50 = vld [vmem:[#allocation5 + $0x298] sm:$0xff]  ;;  %v298_v54 = vld [vmem:[#allocation5 + $0x48] sm:$0xff] }
 0x123   :  { %1743 = vmatpush3.msra.mxu0 %v358_v55  ;;  %773 = vmatpush2.msra.mxu1 %v431_v56  ;;  %v371_v55 = vld [vmem:[#allocation5 + $0x290] sm:$0xff]  ;;  %v373_v56 = vld [vmem:[#allocation5 + $0x2a0] sm:$0xff] }
 0x124   :  { %1744 = vmatprep.subr.mxu0 %v433_v58  ;;  %774 = vmatprep.subr.mxu1 %v427_v59  ;;  %v293_v58 = vld [vmem:[#allocation5 + $0x20] sm:$0xff]  ;;  %v528_v59 = vld [vmem:[#allocation5 + $0x778] sm:$0xff] }
 0x125   :  { %899 = vmatprep.mubr.f32.mxu0 %v2248_v0  ;;  %1745 = vmatpush3.msra.mxu0 %v353_v60  ;;  %v523_v60 = vld [vmem:[#allocation5 + $0x750] sm:$0xff] }
 0x126   :  { %775 = vmatpush2.msra.mxu1 %v426_v63  ;;  %900 = vmatmul.mubr.f32.gmra.mxu0 %v2384_v62  ;;  %v518_v63 = vld [vmem:[#allocation5 + $0x728] sm:$0xff] }
 0x127   :  { %1746 = vmatprep.subr.mxu0 %v428_v3  ;;  %776 = vmatprep.subr.mxu1 %v422_v4  ;;  %v513_v3 = vld [vmem:[#allocation5 + $0x700] sm:$0xff]  ;;  %v508_v4 = vld [vmem:[#allocation5 + $0x6d8] sm:$0xff] }
 0x128   :  { %1747 = vmatpush3.msra.mxu0 %v348_v5  ;;  %777 = vmatpush2.msra.mxu1 %v421_v6  ;;  %v483_v5 = vld [vmem:[#allocation5 + $0x610] sm:$0xff]  ;;  %v468_v6 = vld [vmem:[#allocation5 + $0x598] sm:$0xff] }
 0x129   :  { %1748 = vmatprep.subr.mxu0 %v423_v7  ;;  %778 = vmatprep.subr.mxu1 %v417_v8  ;;  %v453_v7 = vld [vmem:[#allocation5 + $0x520] sm:$0xff] }
 0x12a   :  { %905 = vmatprep.mubr.f32.mxu0 %v2248_v0  ;;  %1749 = vmatpush3.msra.mxu0 %v343_v10  ;;  %v328_v0 = vld [vmem:[#allocation5 + $0x138] sm:$0xff] }
 0x12b   :  { %779 = vmatpush2.msra.mxu1 %v416_v11  ;;  %906 = vmatmul.mubr.f32.gmra.mxu0 %v2392_v14 }
 0x12c   :  { %1750 = vmatprep.subr.mxu0 %v418_v13  ;;  %780 = vmatprep.subr.mxu1 %v412_v57 }
 0x12d   :  { %1751 = vmatpush3.msra.mxu0 %v338_v17  ;;  %976 = vmatprep.mubr.f32.mxu0 %v2362_v1  ;;  %v318_v1 = vld [vmem:[#allocation5 + $0xe8] sm:$0xff] }
 0x12e   :  { %781 = vmatpush2.msra.mxu1 %v411_v19  ;;  %1752 = vmatprep.subr.mxu0 %v413_v20 }
 0x12f   :  { %782 = vmatprep.subr.mxu1 %v407_v21  ;;  %1753 = vmatpush3.msra.mxu0 %v333_v22 }
 0x130   :  { %783 = vmatpush2.msra.mxu1 %v406_v23  ;;  %1754 = vmatprep.subr.mxu0 %v408_v24 }
 0x131   :  { %784 = vmatprep.subr.mxu1 %v402_v25  ;;  %1755 = vmatpush3.msra.mxu0 %v328_v0 }
 0x132   :  { %785 = vmatpush2.msra.mxu1 %v401_v53  ;;  %1756 = vmatprep.subr.mxu0 %v403_v27 }
 0x133   :  { %786 = vmatprep.subr.mxu1 %v397_v28  ;;  %1757 = vmatpush3.msra.mxu0 %v323_v29 }
 0x134   :  { %787 = vmatpush2.msra.mxu1 %v396_v30  ;;  %1758 = vmatprep.subr.mxu0 %v398_v31 }
 0x135   :  { %788 = vmatprep.subr.mxu1 %v392_v32  ;;  %1759 = vmatpush3.msra.mxu0 %v318_v1 }
 0x136   :  { %789 = vmatpush2.msra.mxu1 %v391_v33  ;;  %1760 = vmatprep.subr.mxu0 %v393_v34 }
 0x137   :  { %790 = vmatprep.subr.mxu1 %v387_v35  ;;  %1761 = vmatpush3.msra.mxu0 %v313_v36 }
 0x138   :  { %791 = vmatpush2.msra.mxu1 %v386_v37  ;;  %1762 = vmatprep.subr.mxu0 %v388_v38  ;;  %v529_v38 = vld [vmem:[%s2645_s4] sm:$0x1f]  ;;  %s2249_s4 = smov [#allocation8]  }
 0x139   :  { %792 = vmatprep.subr.mxu1 %v382_v39  ;;  %1763 = vmatpush3.msra.mxu0 %v308_v40  ;;  %v542_v40 = vrot.slane %v529_v38, %v85_v52  ;;  %s1711_s10 = sshll.u32 %s2249_s4, 4  ;;  %s1712_s10 = int_to_ptr.vmem [resolvable:$true] %s1711_s10 }
 0x13a   :  { %793 = vmatpush2.msra.mxu1 %v381_v41  ;;  %1764 = vmatprep.subr.mxu0 %v383_v42  ;;  %v545_v42 = vsub.s32 3, %v2340_v47  ;;  %s2215_s11 = scalar_lea.vmem %s1712_s10, 512  ;;  %p2220_p2 = scmp.lt.s32.totalorder %s1712_s10, %s1712_s10 }
 0x13b   :  { %794 = vmatprep.subr.mxu1 %v377_v43  ;;  %1765 = vmatpush3.msra.mxu0 %v303_v44  ;;  %v538_v43 = vrot.slane %v529_v38, %v81_v49  ;;  %p2216_p1 = scmp.ne.s32.totalorder %s1712_s10, %s2215_s11  ;;  %p2221_p3 = scmp.lt.s32.totalorder %s2215_s11, %s2215_s11 }
 0x13c   :  { %795 = vmatpush2.msra.mxu1 %v376_v45  ;;  %1766 = vmatprep.subr.mxu0 %v378_v46 }
 0x13d   :  { %796 = vmatprep.subr.mxu1 %v372_v50  ;;  %1767 = vmatpush3.msra.mxu0 %v298_v54  ;;  %v546_v50 = vrot.slane %v529_v38, %v545_v42  ;;  %p2222_p4 = por %p2221_p3, %p2220_p2 }
 0x13e   :  { %797 = vmatpush2.msra.mxu1 %v371_v55  ;;  %1768 = vmatprep.subr.mxu0 %v373_v56 }
 0x13f   :  { %799 = vmatmul.mubr.f32.vlgmr.msra.gmra.mxu1 %v2359_v61  ;;  %1769 = vmatpush3.msra.mxu0 %v293_v58  ;;  %p2223_p5 = pnand %p2222_p4, %p2216_p1 }
 0x140   :  { %1892 = vmatprep.subr.mxu1 %v528_v59  ;;  %804 = vmatprep.mubr.f32.mxu1 %v2372_v12 }
 0x141   :  { %977 = vmatmul.mubr.f32.vlgmr.msra.gmra.mxu0 %v2359_v61  ;;  %1893 = vmatpush3.msra.mxu1 %v528_v59  ;;  %v503_v61 = vld [vmem:[#allocation5 + $0x6b0] sm:$0xff]  ;;  %v549_v59 = vsub.s32 4, %v2340_v47 }
 0x142   :  { %981 = vmatprep.mubr.f32.mxu0 %v2372_v12  ;;  %1894 = vmatprep.subr.mxu1 %v523_v60  ;;  %v498_v12 = vld [vmem:[#allocation5 + $0x688] sm:$0xff] }
 0x143   :  { %805 = vmatmul.mubr.f32.gmra.mxu1 %v2376_v16 }
 0x144   :  { %1895 = vmatpush3.msra.mxu1 %v523_v60  ;;  %810 = vmatprep.mubr.f32.mxu1 %v2389_v9 }
 0x145   :  { %1896 = vmatprep.subr.mxu1 %v518_v63  ;;  %982 = vmatmul.mubr.f32.gmra.mxu0 %v2376_v16  ;;  %v493_v16 = vld [vmem:[#allocation5 + $0x660] sm:$0xff] }
 0x146   :  { %1897 = vmatpush3.msra.mxu1 %v518_v63  ;;  %986 = vmatprep.mubr.f32.mxu0 %v2389_v9  ;;  %v488_v9 = vld [vmem:[#allocation5 + $0x638] sm:$0xff] }
 0x147   :  { %1898 = vmatprep.subr.mxu1 %v513_v3  ;;  %811 = vmatmul.mubr.f32.gmra.mxu1 %v2394_v18 }
 0x148   :  { %1899 = vmatpush3.msra.mxu1 %v513_v3  ;;  %816 = vmatprep.mubr.f32.mxu1 %v2401_v26 }
 0x149   :  { %1900 = vmatprep.subr.mxu1 %v508_v4  ;;  %987 = vmatmul.mubr.f32.gmra.mxu0 %v2394_v18  ;;  %v478_v18 = vld [vmem:[#allocation5 + $0x5e8] sm:$0xff] }
 0x14a   :  { %1901 = vmatpush3.msra.mxu1 %v508_v4  ;;  %991 = vmatprep.mubr.f32.mxu0 %v2401_v26  ;;  %v473_v26 = vld [vmem:[#allocation5 + $0x5c0] sm:$0xff] }
 0x14b   :  { %1902 = vmatprep.subr.mxu1 %v503_v61  ;;  %817 = vmatmul.mubr.f32.gmra.mxu1 %v2404_v51 }
 0x14c   :  { %1903 = vmatpush3.msra.mxu1 %v503_v61  ;;  %1924 = vmatprep.mubr.f32.mxu1 %v2364_v2  ;;  %v463_v2 = vld [vmem:[#allocation5 + $0x570] sm:$0xff] }
 0x14d   :  { %1904 = vmatprep.subr.mxu1 %v498_v12  ;;  %992 = vmatmul.mubr.f32.gmra.mxu0 %v2404_v51  ;;  %v458_v51 = vld [vmem:[#allocation5 + $0x548] sm:$0xff] }
 0x14e   :  { %1905 = vmatpush3.msra.mxu1 %v498_v12  ;;  %v2479_v12 = vrot.slane %v529_v38, %v77_v48 }
 0x14f   :  { %1906 = vmatprep.subr.mxu1 %v493_v16 }
 0x150   :  { %1907 = vmatpush3.msra.mxu1 %v493_v16 }
 0x151   :  { %1908 = vmatprep.subr.mxu1 %v488_v9 }
 0x152   :  { %1909 = vmatpush3.msra.mxu1 %v488_v9 }
 0x153   :  { %1910 = vmatprep.subr.mxu1 %v483_v5 }
 0x154   :  { %1911 = vmatpush3.msra.mxu1 %v483_v5 }
 0x155   :  { %1912 = vmatprep.subr.mxu1 %v478_v18 }
 0x156   :  { %1913 = vmatpush3.msra.mxu1 %v478_v18  ;;  %v550_v18 = vrot.slane %v529_v38, %v549_v59 }
 0x157   :  { %1914 = vmatprep.subr.mxu1 %v473_v26 }
 0x158   :  { %1915 = vmatpush3.msra.mxu1 %v473_v26 }
 0x159   :  { %1916 = vmatprep.subr.mxu1 %v468_v6 }
 0x15a   :  { %1917 = vmatpush3.msra.mxu1 %v468_v6 }
 0x15b   :  { %1918 = vmatprep.subr.mxu1 %v463_v2 }
 0x15c   :  { %1919 = vmatpush3.msra.mxu1 %v463_v2 }
 0x15d   :  { %1920 = vmatprep.subr.mxu1 %v458_v51 }
 0x15e   :  { %1921 = vmatpush3.msra.mxu1 %v458_v51 }
 0x15f   :  { %1922 = vmatprep.subr.mxu1 %v453_v7 }
 0x160   :  { %1923 = vmatpush3.msra.mxu1 %v453_v7 }
 0x161   :  { %1925 = vmatmul.mubr.f32.vlgmr.msra.gmra.mxu1 %v2374_v15 }
 0x162   :  { %1927 = vmatprep.mubr.f32.mxu1 %v2384_v62 }
 0x165   :  { %1928 = vmatmul.mubr.f32.gmra.mxu1 %v2392_v14 }
 0x1b4   :  { %v2446_v20 = vpop.f32.mrf.mxu1 }
 0x1b5   :  { %v2436_v8 = vpop.f32.mrf.mxu0 }
 0x1b6   :  { %v713_v15 = vpop.f32.mrf.mxu1 }
 0x1b7   :  { %v624_v10 = vpop.f32.mrf.mxu0 }
 0x1b8   :  { %v625_v55 = vadd.f32 %v624_v10, %v538_v43 }
 0x1ba   :  { %v2450_v22 = vpop.f32.mrf.mxu1  ;;  %v714_v49 = vadd.f32 %v713_v15, %v625_v55 }
 0x1bb   :  { %v2438_v11 = vpop.f32.mrf.mxu0 }
 0x1bc   :  { %v719_v23 = vpop.f32.mrf.mxu1 }
 0x1bd   :  { %v630_v13 = vpop.f32.mrf.mxu0 }
 0x1be   :  { %v631_v56 = vadd.f32 %v630_v13, %v538_v43  ;;  %v623_v13 = vadd.f32 %v2436_v8, %v2479_v12 }
 0x1c0   :  { %v720_v16 = vadd.f32 %v719_v23, %v631_v56 }
 0x1cb   :  { %v2452_v24 = vpop.f32.mrf.mxu1 }
 0x1cd   :  { %v2454_v0 = vpop.f32.mrf.mxu1 }
 0x1d1   :  { %v2440_v57 = vpop.f32.mrf.mxu0  ;;  %v2458_v28 = vpop.f32.mrf.mxu1 }
 0x1d3   :  { %v2442_v17 = vpop.f32.mrf.mxu0  ;;  %v2462_v30 = vpop.f32.mrf.mxu1 }
 0x1d7   :  { %v2444_v19 = vpop.f32.mrf.mxu0 }
 0x1d9   :  { %v2448_v21 = vpop.f32.mrf.mxu0 }
 0x1dc   :  { %v889_v62 = vpop.f32.mrf.mxu0 }
 0x1de   :  { %v891_v14 = vpop.f32.mrf.mxu0 }
 0x1e1   :  { %v895_v25 = vpop.f32.mrf.mxu0 }
 0x1e3   :  { %v897_v53 = vpop.f32.mrf.mxu0 }
 0x1e6   :  { %v2456_v27 = vpop.f32.mrf.mxu0 }
 0x1e8   :  { %v2460_v29 = vpop.f32.mrf.mxu0 }
 0x1eb   :  { %v2464_v32 = vpop.f32.mrf.mxu0 }
 0x1ed   :  { %v2466_v33 = vpop.f32.mrf.mxu0 }
 0x1ff   :  { %v800_v31 = vpop.f32.mrf.mxu1 }
 0x200   :  { %v801_v45 = vadd.f32 %v800_v31, %v542_v40 }
 0x201   :  { %v802_v1 = vpop.f32.mrf.mxu1  ;;  %v1770_v34 = vpop.f32.mrf.mxu0 }
 0x202   :  { %v890_v60 = vadd.f32 %v889_v62, %v801_v45  ;;  %v803_v3 = vadd.f32 %v802_v1, %v546_v50 }
 0x203   :  { %v806_v35 = vpop.f32.mrf.mxu1  ;;  %v1771_v36 = vpop.f32.mrf.mxu0 }
 0x204   :  { %v807_v54 = vadd.f32 %v806_v35, %v542_v40  ;;  %v1772_v9 = vadd.f32 %v1771_v36, %v1770_v34  ;;  %v1082_v26 = vadd.f32 %v890_v60, %v714_v49  ;;  %v892_v2 = vadd.f32 %v891_v14, %v803_v3 }
 0x205   :  { %v808_v37 = vpop.f32.mrf.mxu1  ;;  %v1773_v39 = vpop.f32.mrf.mxu0  ;;  %v712_v35 = vadd.f32 %v2446_v20, %v623_v13  ;;  %v629_v14 = vadd.f32 %v2438_v11, %v2479_v12 }
 0x206   :  { %v896_v52 = vadd.f32 %v895_v25, %v807_v54  ;;  %v809_v4 = vadd.f32 %v808_v37, %v546_v50  ;;  %v979_v47 = vadd.f32 %v1772_v9, %v550_v18  ;;  %v1086_v34 = vadd.f32 %v1082_v26, %v892_v2 }
 0x207   :  { %v812_v41 = vpop.f32.mrf.mxu1  ;;  %v1774_v44 = vpop.f32.mrf.mxu0  ;;  %v1098_v59 = vadd.f32 %v714_v49, %v712_v35  ;;  %v718_v11 = vadd.f32 %v2450_v22, %v629_v14 }
 0x208   :  { %v1775_v61 = vadd.f32 %v1774_v44, %v1773_v39  ;;  %v1083_v51 = vadd.f32 %v896_v52, %v720_v16  ;;  %v898_v7 = vadd.f32 %v897_v53, %v809_v4  ;;  %v813_v1 = vadd.f32 %v812_v41, %v542_v40 }
 0x209   :  { %v814_v46 = vpop.f32.mrf.mxu1  ;;  %v1776_v58 = vpop.f32.mrf.mxu0  ;;  %v637_v53 = vadd.f32 %v2442_v17, %v538_v43  ;;  %v643_v39 = vadd.f32 %v2448_v21, %v538_v43  ;;  %v1162_v44 = vadd.f32 %v890_v60, %v712_v35 }
 0x20a   :  { %v984_v10 = vadd.f32 %v1775_v61, %v550_v18  ;;  %v1087_v15 = vadd.f32 %v1083_v51, %v898_v7  ;;  %v902_v41 = vadd.f32 %v2456_v27, %v813_v1  ;;  %v815_v45 = vadd.f32 %v814_v46, %v546_v50 }
 0x20b   :  { %v818_v63 = vpop.f32.mrf.mxu1  ;;  %v1777_v5 = vpop.f32.mrf.mxu0  ;;  %v726_v17 = vadd.f32 %v2454_v0, %v637_v53  ;;  %v732_v21 = vadd.f32 %v2462_v30, %v643_v39  ;;  %v1099_v0 = vadd.f32 %v720_v16, %v718_v11  ;;  %v641_v16 = vadd.f32 %v2444_v19, %v2479_v12  ;;  %v1225_v39 = vld [vmem:[#allocation7 + $0xf8] sm:$0xff] }
 0x20c   :  { %v819_v36 = vadd.f32 %v818_v63, %v542_v40  ;;  %v1778_v54 = vadd.f32 %v1777_v5, %v1776_v58  ;;  %v904_v46 = vadd.f32 %v2460_v29, %v815_v45  ;;  %v1396_v29 = vadd.f32 %v892_v2, %v712_v35  ;;  %1930 = vmatprep.subr.mxu0 %v1225_v39  ;;  %v1223_v45 = vld [vmem:[#allocation7 + $0xe8] sm:$0xff] }
 0x20d   :  { %v820_v6 = vpop.f32.mrf.mxu1  ;;  %v1779_v25 = vpop.f32.mrf.mxu0  ;;  %v1084_v27 = vadd.f32 %v902_v41, %v726_v17  ;;  %1931 = vmatpush3.msra.mxu0 %v1225_v39 }
 0x20e   :  { %v908_v20 = vadd.f32 %v2464_v32, %v819_v36  ;;  %v821_v40 = vadd.f32 %v820_v6, %v546_v50  ;;  %v989_v58 = vadd.f32 %v1778_v54, %v550_v18  ;;  %v1163_v32 = vadd.f32 %v896_v52, %v718_v11  ;;  %v1159_v54 = vld [vmem:[#allocation7 + $0x68] sm:$0xff] }
 0x20f   :  { %v1780_v37 = vpop.f32.mrf.mxu0  ;;  %v1088_v5 = vadd.f32 %v1084_v27, %v904_v46  ;;  %v1397_v52 = vadd.f32 %v898_v7, %v718_v11 }
 0x210   :  { %v1781_v56 = vadd.f32 %v1780_v37, %v1779_v25  ;;  %v1085_v50 = vadd.f32 %v908_v20, %v732_v21  ;;  %v910_v22 = vadd.f32 %v2466_v33, %v821_v40  ;;  %v635_v33 = vadd.f32 %v2440_v57, %v2479_v12  ;;  %v1221_v40 = vld [vmem:[#allocation7 + $0xd8] sm:$0xff] }
 0x211   :  { %v730_v57 = vadd.f32 %v2458_v28, %v641_v16 }
 0x212   :  { %v994_v4 = vadd.f32 %v1781_v56, %v550_v18  ;;  %v1089_v26 = vadd.f32 %v1085_v50, %v910_v22  ;;  %v724_v7 = vadd.f32 %v2452_v24, %v635_v33  ;;  %v1220_v56 = vld [vmem:[#allocation7 + $0xd0] sm:$0xff] }
 0x213   :  { %v1165_v12 = vadd.f32 %v908_v20, %v730_v57  ;;  %v1101_v24 = vadd.f32 %v732_v21, %v730_v57  ;;  %v1158_v20 = vld [vmem:[#allocation7 + $0x60] sm:$0xff] }
 0x214   :  { %v1164_v19 = vadd.f32 %v902_v41, %v724_v7  ;;  %v1160_v41 = vld [vmem:[#allocation7 + $0x70] sm:$0xff] }
 0x221   :  { %v1926_v62 = vpop.f32.mrf.mxu1 }
 0x222   :  { %v1069_v31 = vadd.f32 %v1926_v62, %v984_v10 }
 0x223   :  { %v1063_v48 = vpop.f32.mrf.mxu1 }
 0x224   :  { %v1064_v23 = vadd.f32 %v1063_v48, %v979_v47  ;;  %v1091_v38 = vadd.f32 %v1087_v15, %v1069_v31  ;;  %v1550_v2 = vadd.f32 %v1069_v31, %v718_v11  ;;  %v1100_v15 = vadd.f32 %v726_v17, %v724_v7 }
 0x225   :  { %v1929_v42 = vpop.f32.mrf.mxu1 }
 0x226   :  { %v1090_v8 = vadd.f32 %v1086_v34, %v1064_v23  ;;  %v1095_v63 = vmul.f32 0.25, %v1091_v38  ;;  %v1079_v30 = vadd.f32 %v1929_v42, %v994_v4  ;;  %v1549_v13 = vadd.f32 %v1064_v23, %v712_v35  ;;  %v1224_v42 = vld [vmem:[#allocation7 + $0xf0] sm:$0xff] }
 0x227   :  { %v1073_v43 = vpop.f32.mrf.mxu1  ;;  %v1398_v34 = vadd.f32 %v904_v46, %v724_v7  ;;  %v1399_v35 = vadd.f32 %v910_v22, %v730_v57  ;;  %1932 = vmatprep.subr.mxu0 %v1224_v42 }
 0x228   :  { %v1094_v55 = vmul.f32 0.25, %v1090_v8  ;;  %v1074_v61 = vadd.f32 %v1073_v43, %v989_v58  ;;  %v2501_v49 = vsub.f32 %v1163_v32, %v1095_v63  ;;  %v2503_v9 = vsub.f32 %v1099_v0, %v1095_v63  ;;  %1933 = vmatpush3.msra.mxu0 %v1224_v42  ;;  %v1157_v42 = vld [vmem:[#allocation7 + $0x58] sm:$0xff] }
 0x229   :  { %v1093_v51 = vadd.f32 %v1089_v26, %v1079_v30  ;;  %v2513_v10 = vsub.f32 %v1397_v52, %v1095_v63  ;;  %v2521_v48 = vsub.f32 %v1550_v2, %v1095_v63  ;;  %v1552_v37 = vadd.f32 %v1079_v30, %v730_v57  ;;  %1934 = vmatprep.subr.mxu0 %v1223_v45 }
 0x22a   :  { %v2492_v3 = vsub.f32 %v1162_v44, %v1094_v55  ;;  %v2495_v60 = vsub.f32 %v1098_v59, %v1094_v55  ;;  %v1092_v18 = vadd.f32 %v1088_v5, %v1074_v61  ;;  %v2509_v6 = vsub.f32 %v1396_v29, %v1094_v55  ;;  %v1161_v44 = vld [vmem:[#allocation7 + $0x78] sm:$0xff]  ;;  %1935 = vmatpush3.msra.mxu0 %v1223_v45  ;;  %v1156_v45 = vld [vmem:[#allocation7 + $0x50] sm:$0xff] }
 0x22b   :  { %v2518_v25 = vsub.f32 %v1549_v13, %v1094_v55  ;;  %v1097_v47 = vmul.f32 0.25, %v1093_v51  ;;  %v1551_v53 = vadd.f32 %v1074_v61, %v724_v7  ;;  %1968 = vmatprep.subr.mxu1 %v1161_v44  ;;  %v1222_v55 = vld [vmem:[#allocation7 + $0xe0] sm:$0xff] }
 0x22c   :  { %1170 = vmax.xlane.f32.xlu0 %v2492_v3  ;;  %1106 = vmax.xlane.f32.xlu1 %v2495_v60  ;;  %v1096_v62 = vmul.f32 0.25, %v1092_v18 }
 0x22d   :  { %v2527_v31 = vsub.f32 %v1165_v12, %v1097_v47  ;;  %v2533_v23 = vsub.f32 %v1101_v24, %v1097_v47  ;;  %v2539_v14 = vsub.f32 %v1399_v35, %v1097_v47  ;;  %v2545_v8 = vsub.f32 %v1552_v37, %v1097_v47  ;;  %1969 = vmatpush3.msra.mxu1 %v1161_v44 }
 0x22e   :  { %v2525_v1 = vsub.f32 %v1164_v19, %v1096_v62  ;;  %v2531_v28 = vsub.f32 %v1100_v15, %v1096_v62  ;;  %v2537_v36 = vsub.f32 %v1398_v34, %v1096_v62  ;;  %v2543_v38 = vsub.f32 %v1551_v53, %v1096_v62  ;;  %1970 = vmatprep.subr.mxu1 %v1160_v41 }
 0x22f   :  { %1971 = vmatpush3.msra.mxu1 %v1160_v41  ;;  %1936 = vmatprep.subr.mxu0 %v1222_v55  ;;  %v1218_v41 = vld [vmem:[#allocation7 + $0xc0] sm:$0xff] }
 0x230   :  { %1172 = vmax.xlane.f32.xlu0 %v2501_v49  ;;  %1108 = vmax.xlane.f32.xlu1 %v2503_v9 }
 0x231   :  { %1972 = vmatprep.subr.mxu1 %v1159_v54  ;;  %1937 = vmatpush3.msra.mxu0 %v1222_v55 }
 0x232   :  { %1973 = vmatpush3.msra.mxu1 %v1159_v54  ;;  %1938 = vmatprep.subr.mxu0 %v1221_v40 }
 0x233   :  { %1974 = vmatprep.subr.mxu1 %v1158_v20  ;;  %1939 = vmatpush3.msra.mxu0 %v1221_v40  ;;  %v1155_v40 = vld [vmem:[#allocation7 + $0x48] sm:$0xff] }
 0x234   :  { %1404 = vmax.xlane.f32.xlu0 %v2509_v6  ;;  %1406 = vmax.xlane.f32.xlu1 %v2513_v10 }
 0x235   :  { %1975 = vmatpush3.msra.mxu1 %v1158_v20  ;;  %1940 = vmatprep.subr.mxu0 %v1220_v56 }
 0x236   :  { %1941 = vmatpush3.msra.mxu0 %v1220_v56  ;;  %1976 = vmatprep.subr.mxu1 %v1157_v42  ;;  %v1216_v56 = vld [vmem:[#allocation7 + $0xb0] sm:$0xff] }
 0x237   :  { %1977 = vmatpush3.msra.mxu1 %v1157_v42 }
 0x238   :  { %1557 = vmax.xlane.f32.xlu0 %v2518_v25  ;;  %1559 = vmax.xlane.f32.xlu1 %v2521_v48 }
 0x239   :  { %1978 = vmatprep.subr.mxu1 %v1156_v45 }
 0x23a   :  { %1979 = vmatpush3.msra.mxu1 %v1156_v45  ;;  %v1455_v45 = vld [vmem:[#allocation7 + $0x158] sm:$0xff] }
 0x23b   :  { %1980 = vmatprep.subr.mxu1 %v1155_v40 }
 0x23c   :  { %1174 = vmax.xlane.f32.xlu0 %v2525_v1  ;;  %1176 = vmax.xlane.f32.xlu1 %v2527_v31 }
 0x23d   :  { %1981 = vmatpush3.msra.mxu1 %v1155_v40 }
 0x240   :  { %1110 = vmax.xlane.f32.xlu0 %v2531_v28  ;;  %1112 = vmax.xlane.f32.xlu1 %v2533_v23 }
 0x244   :  { %1408 = vmax.xlane.f32.xlu0 %v2537_v36  ;;  %1410 = vmax.xlane.f32.xlu1 %v2539_v14 }
 0x248   :  { %1561 = vmax.xlane.f32.xlu0 %v2543_v38  ;;  %1563 = vmax.xlane.f32.xlu1 %v2545_v8 }
 0x2b5   :  { %v1171_v59 = vpop.xlane.xlu0 %1170  ;;  %v1107_v17 = vpop.xlane.xlu1 %1106 }
 0x2b6   :  { %v1178_v11 = vsub.f32 %v2492_v3, %v1171_v59  ;;  %v1114_v63 = vsub.f32 %v2495_v60, %v1107_v17  ;;  %v1154_v59 = vld [vmem:[#allocation7 + $0x40] sm:$0xff] }
 0x2b7   :  { %1982 = vmatprep.subr.mxu1 %v1154_v59 }
 0x2b8   :  { %v1182_v21 = vmul.f32 1.442695, %v1178_v11  ;;  %v1118_v43 = vmul.f32 1.442695, %v1114_v63  ;;  %v1215_v63 = vld [vmem:[#allocation7 + $0xa8] sm:$0xff]  ;;  %1983 = vmatpush3.msra.mxu1 %v1154_v59 }
 0x2b9   :  { %v1173_v27 = vpop.xlane.xlu0 %1172  ;;  %v1109_v58 = vpop.xlane.xlu1 %1108 }
 0x2ba   :  { %2091 = vpow2.f32 %v1182_v21  ;;  %v1179_v46 = vsub.f32 %v2501_v49, %v1173_v27  ;;  %v1115_v32 = vsub.f32 %v2503_v9, %v1109_v58  ;;  %v1153_v21 = vld [vmem:[#allocation7 + $0x38] sm:$0xff]  ;;  %v1214_v27 = vld [vmem:[#allocation7 + $0xa0] sm:$0xff] }
 0x2bb   :  { %2093 = vpow2.f32 %v1118_v43  ;;  %1984 = vmatprep.subr.mxu1 %v1153_v21 }
 0x2bc   :  { %v1184_v50 = vmul.f32 1.442695, %v1179_v46  ;;  %v1120_v22 = vmul.f32 1.442695, %v1115_v32  ;;  %v1152_v46 = vld [vmem:[#allocation7 + $0x30] sm:$0xff]  ;;  %1985 = vmatpush3.msra.mxu1 %v1153_v21  ;;  %v1213_v32 = vld [vmem:[#allocation7 + $0x98] sm:$0xff] }
 0x2bd   :  { %v1405_v4 = vpop.xlane.xlu0 %1404  ;;  %v1407_v3 = vpop.xlane.xlu1 %1406  ;;  %1986 = vmatprep.subr.mxu1 %v1152_v46  ;;  %v1608_v21 = vld [vmem:[#allocation7 + $0x1d8] sm:$0xff] }
 0x2be   :  { %2095 = vpow2.f32 %v1184_v50  ;;  %v1412_v0 = vsub.f32 %v2509_v6, %v1405_v4  ;;  %v1413_v61 = vsub.f32 %v2513_v10, %v1407_v3  ;;  %v1151_v50 = vld [vmem:[#allocation7 + $0x28] sm:$0xff]  ;;  %1987 = vmatpush3.msra.mxu1 %v1152_v46  ;;  %v1150_v3 = vld [vmem:[#allocation7 + $0x20] sm:$0xff] }
 0x2bf   :  { %2097 = vpow2.f32 %v1120_v22  ;;  %1988 = vmatprep.subr.mxu1 %v1151_v50 }
 0x2c0   :  { %v1416_v60 = vmul.f32 1.442695, %v1412_v0  ;;  %v1418_v30 = vmul.f32 1.442695, %v1413_v61  ;;  %v1212_v0 = vld [vmem:[#allocation7 + $0x90] sm:$0xff]  ;;  %1989 = vmatpush3.msra.mxu1 %v1151_v50  ;;  %v1211_v61 = vld [vmem:[#allocation7 + $0x88] sm:$0xff] }
 0x2c1   :  { %v1558_v5 = vpop.xlane.xlu0 %1557  ;;  %v1560_v29 = vpop.xlane.xlu1 %1559  ;;  %1990 = vmatprep.subr.mxu1 %v1150_v3  ;;  %v1452_v50 = vld [vmem:[#allocation7 + $0x140] sm:$0xff] }
 0x2c2   :  { %2099 = vpow2.f32 %v1416_v60  ;;  %v1565_v49 = vsub.f32 %v2518_v25, %v1558_v5  ;;  %v1566_v9 = vsub.f32 %v2521_v48, %v1560_v29  ;;  %v1149_v60 = vld [vmem:[#allocation7 + $0x18] sm:$0xff]  ;;  %1991 = vmatpush3.msra.mxu1 %v1150_v3  ;;  %v1210_v5 = vld [vmem:[#allocation7 + $0x80] sm:$0xff] }
 0x2c3   :  { %2101 = vpow2.f32 %v1418_v30  ;;  %1992 = vmatprep.subr.mxu1 %v1149_v60  ;;  %v1459_v29 = vld [vmem:[#allocation7 + $0x178] sm:$0xff] }
 0x2c4   :  { %v1569_v26 = vmul.f32 1.442695, %v1565_v49  ;;  %v1571_v52 = vmul.f32 1.442695, %v1566_v9  ;;  %v1148_v49 = vld [vmem:[#allocation7 + $0x10] sm:$0xff]  ;;  %1993 = vmatpush3.msra.mxu1 %v1149_v60  ;;  %v1147_v9 = vld [vmem:[#allocation7 + $0x8] sm:$0xff] }
 0x2c5   :  { %v1175_v33 = vpop.xlane.xlu0 %1174  ;;  %v1177_v6 = vpop.xlane.xlu1 %1176  ;;  %1994 = vmatprep.subr.mxu1 %v1148_v49  ;;  %v1451_v60 = vld [vmem:[#allocation7 + $0x138] sm:$0xff] }
 0x2c6   :  { %2103 = vpow2.f32 %v1569_v26  ;;  %v1180_v18 = vsub.f32 %v2525_v1, %v1175_v33  ;;  %v1181_v51 = vsub.f32 %v2527_v31, %v1177_v6  ;;  %1995 = vmatpush3.msra.mxu1 %v1148_v49  ;;  %v1146_v26 = vld [vmem:[#allocation7] sm:$0xff] }
 0x2c7   :  { %v2558_v16 = vpop.eup %2091  ;;  %2105 = vpow2.f32 %v1571_v52  ;;  %1996 = vmatprep.subr.mxu1 %v1147_v9  ;;  %v1612_v52 = vld [vmem:[#allocation7 + $0x1f8] sm:$0xff] }
 0x2c8   :  { %v1186_v10 = vmul.f32 1.442695, %v1180_v18  ;;  %1190 = vadd.xlane.f32.xlu0 %v2558_v16  ;;  %v1188_v13 = vmul.f32 1.442695, %v1181_v51  ;;  %v2562_v7 = vpop.eup %2093  ;;  %1997 = vmatpush3.msra.mxu1 %v1147_v9 }
 0x2c9   :  { %v1111_v2 = vpop.xlane.xlu0 %1110  ;;  %v1113_v25 = vpop.xlane.xlu1 %1112  ;;  %1998 = vmatprep.subr.mxu1 %v1146_v26 }
 0x2ca   :  { %2107 = vpow2.f32 %v1186_v10  ;;  %v1116_v62 = vsub.f32 %v2531_v28, %v1111_v2  ;;  %v1117_v47 = vsub.f32 %v2533_v23, %v1113_v25  ;;  %1999 = vmatpush3.msra.mxu1 %v1146_v26 }
 0x2cb   :  { %v2565_v57 = vpop.eup %2095  ;;  %2109 = vpow2.f32 %v1188_v13  ;;  %2044 = vmatprep.subr.mxu1 %v1612_v52 }
 0x2cc   :  { %v1122_v48 = vmul.f32 1.442695, %v1116_v62  ;;  %1192 = vadd.xlane.f32.xlu1 %v2565_v57  ;;  %1126 = vadd.xlane.f32.xlu0 %v2562_v7  ;;  %v1124_v19 = vmul.f32 1.442695, %v1117_v47  ;;  %v2570_v1 = vpop.eup %2097 }
 0x2cd   :  { %v1409_v12 = vpop.xlane.xlu0 %1408  ;;  %v1411_v15 = vpop.xlane.xlu1 %1410 }
 0x2ce   :  { %2111 = vpow2.f32 %v1122_v48  ;;  %v1414_v31 = vsub.f32 %v2537_v36, %v1409_v12  ;;  %v1415_v28 = vsub.f32 %v2539_v14, %v1411_v15  ;;  %v1219_v36 = vld [vmem:[#allocation7 + $0xc8] sm:$0xff] }
 0x2cf   :  { %v2573_v24 = vpop.eup %2099  ;;  %2113 = vpow2.f32 %v1124_v19  ;;  %1942 = vmatprep.subr.mxu0 %v1219_v36 }
 0x2d0   :  { %v1420_v34 = vmul.f32 1.442695, %v1414_v31  ;;  %1424 = vadd.xlane.f32.xlu0 %v2573_v24  ;;  %1128 = vadd.xlane.f32.xlu1 %v2570_v1  ;;  %v1422_v23 = vmul.f32 1.442695, %v1415_v28  ;;  %v2578_v53 = vpop.eup %2101 }
 0x2d1   :  { %v1562_v35 = vpop.xlane.xlu0 %1561  ;;  %v1564_v39 = vpop.xlane.xlu1 %1563  ;;  %1943 = vmatpush3.msra.mxu0 %v1219_v36 }
 0x2d2   :  { %2115 = vpow2.f32 %v1420_v34  ;;  %v1567_v37 = vsub.f32 %v2543_v38, %v1562_v35  ;;  %v1568_v14 = vsub.f32 %v2545_v8, %v1564_v39  ;;  %1944 = vmatprep.subr.mxu0 %v1218_v41  ;;  %v1217_v8 = vld [vmem:[#allocation7 + $0xb8] sm:$0xff]  ;;  %v1458_v39 = vld [vmem:[#allocation7 + $0x170] sm:$0xff] }
 0x2d3   :  { %v2581_v44 = vpop.eup %2103  ;;  %2117 = vpow2.f32 %v1422_v23  ;;  %1945 = vmatpush3.msra.mxu0 %v1218_v41  ;;  %v1456_v41 = vld [vmem:[#allocation7 + $0x160] sm:$0xff] }
 0x2d4   :  { %v1573_v54 = vmul.f32 1.442695, %v1567_v37  ;;  %1577 = vadd.xlane.f32.xlu0 %v2581_v44  ;;  %1426 = vadd.xlane.f32.xlu1 %v2578_v53  ;;  %v2586_v38 = vpop.eup %2105  ;;  %v1575_v55 = vmul.f32 1.442695, %v1568_v14  ;;  %v1457_v14 = vld [vmem:[#allocation7 + $0x168] sm:$0xff] }
 0x2d5   :  { %1946 = vmatprep.subr.mxu0 %v1217_v8 }
 0x2d6   :  { %2119 = vpow2.f32 %v1573_v54  ;;  %1947 = vmatpush3.msra.mxu0 %v1217_v8  ;;  %v1610_v54 = vld [vmem:[#allocation7 + $0x1e8] sm:$0xff]  ;;  %v1609_v8 = vld [vmem:[#allocation7 + $0x1e0] sm:$0xff] }
 0x2d7   :  { %v2588_v20 = vpop.eup %2107  ;;  %2121 = vpow2.f32 %v1575_v55  ;;  %1948 = vmatprep.subr.mxu0 %v1216_v56 }
 0x2d8   :  { %1194 = vadd.xlane.f32.xlu0 %v2588_v20  ;;  %1579 = vadd.xlane.f32.xlu1 %v2586_v38  ;;  %v2592_v11 = vpop.eup %2109 }
 0x2d9   :  { %1949 = vmatpush3.msra.mxu0 %v1216_v56 }
 0x2da   :  { %1950 = vmatprep.subr.mxu0 %v1215_v63 }
 0x2db   :  { %v2594_v17 = vpop.eup %2111  ;;  %1951 = vmatpush3.msra.mxu0 %v1215_v63  ;;  %v1453_v63 = vld [vmem:[#allocation7 + $0x148] sm:$0xff] }
 0x2dc   :  { %1130 = vadd.xlane.f32.xlu0 %v2594_v17  ;;  %1196 = vadd.xlane.f32.xlu1 %v2592_v11  ;;  %v2598_v43 = vpop.eup %2113 }
 0x2dd   :  { %1952 = vmatprep.subr.mxu0 %v1214_v27 }
 0x2de   :  { %1953 = vmatpush3.msra.mxu0 %v1214_v27 }
 0x2df   :  { %v2600_v58 = vpop.eup %2115  ;;  %1954 = vmatprep.subr.mxu0 %v1213_v32 }
 0x2e0   :  { %1428 = vadd.xlane.f32.xlu0 %v2600_v58  ;;  %1132 = vadd.xlane.f32.xlu1 %v2598_v43  ;;  %v2604_v22 = vpop.eup %2117 }
 0x2e1   :  { %1955 = vmatpush3.msra.mxu0 %v1213_v32 }
 0x2e2   :  { %1956 = vmatprep.subr.mxu0 %v1212_v0 }
 0x2e3   :  { %v2606_v4 = vpop.eup %2119  ;;  %1957 = vmatpush3.msra.mxu0 %v1212_v0 }
 0x2e4   :  { %1581 = vadd.xlane.f32.xlu0 %v2606_v4  ;;  %1430 = vadd.xlane.f32.xlu1 %v2604_v22  ;;  %v2610_v30 = vpop.eup %2121 }
 0x2e5   :  { %1958 = vmatprep.subr.mxu0 %v1211_v61 }
 0x2e6   :  { %1959 = vmatpush3.msra.mxu0 %v1211_v61 }
 0x2e7   :  { %1960 = vmatprep.subr.mxu0 %v1210_v5 }
 0x2e8   :  { %1583 = vadd.xlane.f32.xlu1 %v2610_v30  ;;  %1961 = vmatpush3.msra.mxu0 %v1210_v5  ;;  %v1606_v5 = vld [vmem:[#allocation7 + $0x1c8] sm:$0xff] }
 0x2e9   :  { %2006 = vmatprep.subr.mxu0 %v1459_v29 }
 0x351   :  { %v1191_v33 = vpop.xlane.xlu0 %1190 }
 0x352   :  { %2123 = vrcp.f32 %v1191_v33 }
 0x355   :  { %v1127_v18 = vpop.xlane.xlu0 %1126  ;;  %v1193_v6 = vpop.xlane.xlu1 %1192 }
 0x356   :  { %2125 = vrcp.f32 %v1127_v18  ;;  %v1605_v18 = vld [vmem:[#allocation7 + $0x1c0] sm:$0xff] }
 0x357   :  { %2127 = vrcp.f32 %v1193_v6 }
 0x359   :  { %v1425_v51 = vpop.xlane.xlu0 %1424  ;;  %v1129_v10 = vpop.xlane.xlu1 %1128 }
 0x35a   :  { %2129 = vrcp.f32 %v1129_v10  ;;  %v1604_v10 = vld [vmem:[#allocation7 + $0x1b8] sm:$0xff] }
 0x35d   :  { %v1578_v13 = vpop.xlane.xlu0 %1577  ;;  %v2613_v2 = vpop.xlane.xlu1 %1426 }
 0x35f   :  { %v2124_v62 = vpop.eup %2123 }
 0x360   :  { %v1202_v25 = vmul.f32 %v2124_v62, %v2558_v16  ;;  %v1603_v62 = vld [vmem:[#allocation7 + $0x1b0] sm:$0xff] }
 0x361   :  { %v1195_v47 = vpop.xlane.xlu0 %1194  ;;  %v2616_v48 = vpop.xlane.xlu1 %1579 }
 0x362   :  { %2131 = vrcp.f32 %v1195_v47  ;;  %v1206_v19 = vmax.f32 %v1202_v25, 0.001  ;;  %v1447_v47 = vld [vmem:[#allocation7 + $0x118] sm:$0xff] }
 0x363   :  { %v2126_v12 = vpop.eup %2125  ;;  %2133 = vrcp.f32 %v1425_v51  ;;  %v1449_v51 = vld [vmem:[#allocation7 + $0x128] sm:$0xff] }
 0x364   :  { %v2128_v31 = vpop.eup %2127  ;;  %1962 = vmatprep.mubr.f32.mxu0 %v1206_v19  ;;  %v1138_v15 = vmul.f32 %v2126_v12, %v2562_v7  ;;  %v1601_v12 = vld [vmem:[#allocation7 + $0x1a0] sm:$0xff] }
 0x365   :  { %v1131_v28 = vpop.xlane.xlu0 %1130  ;;  %v1197_v34 = vpop.xlane.xlu1 %1196  ;;  %v1203_v23 = vmul.f32 %v2128_v31, %v2565_v57  ;;  %v1611_v57 = vld [vmem:[#allocation7 + $0x1f0] sm:$0xff] }
 0x366   :  { %2135 = vrcp.f32 %v1131_v28  ;;  %v1142_v35 = vmax.f32 %v1138_v15, 0.001  ;;  %v1445_v15 = vld [vmem:[#allocation7 + $0x108] sm:$0xff]  ;;  %v1600_v28 = vld [vmem:[#allocation7 + $0x198] sm:$0xff] }
 0x367   :  { %2137 = vrcp.f32 %v1197_v34  ;;  %v1207_v37 = vmax.f32 %v1203_v23, 0.001  ;;  %v2130_v16 = vpop.eup %2129 }
 0x368   :  { %2000 = vmatprep.mubr.f32.mxu1 %v1142_v35  ;;  %v1139_v42 = vmul.f32 %v2130_v16, %v2570_v1  ;;  %v1454_v1 = vld [vmem:[#allocation7 + $0x150] sm:$0xff] }
 0x369   :  { %1963 = vmatmul.mubr.f32.vlgmr.msra.gmra.mxu0 %v1207_v37  ;;  %v1133_v36 = vpop.xlane.xlu1 %1132  ;;  %v1429_v59 = vpop.xlane.xlu0 %1428  ;;  %v1444_v37 = vld [vmem:[#allocation7 + $0x100] sm:$0xff]  ;;  %v1599_v16 = vld [vmem:[#allocation7 + $0x190] sm:$0xff] }
 0x36a   :  { %2007 = vmatpush3.msra.mxu0 %v1459_v29  ;;  %2139 = vrcp.f32 %v1133_v36  ;;  %v1143_v7 = vmax.f32 %v1139_v42, 0.001  ;;  %v1598_v42 = vld [vmem:[#allocation7 + $0x188] sm:$0xff] }
 0x36b   :  { %2008 = vmatprep.subr.mxu0 %v1458_v39  ;;  %2141 = vrcp.f32 %v1578_v13 }
 0x36c   :  { %2009 = vmatpush3.msra.mxu0 %v1458_v39  ;;  %2001 = vmatmul.mubr.f32.vlgmr.msra.gmra.mxu1 %v1143_v7  ;;  %2143 = vrcp.f32 %v2613_v2 }
 0x36d   :  { %2010 = vmatprep.subr.mxu0 %v1457_v14  ;;  %2045 = vmatpush3.msra.mxu1 %v1612_v52  ;;  %v1431_v3 = vpop.xlane.xlu1 %1430  ;;  %2145 = vrcp.f32 %v1429_v59  ;;  %v1582_v26 = vpop.xlane.xlu0 %1581 }
 0x36e   :  { %2011 = vmatpush3.msra.mxu0 %v1457_v14  ;;  %2046 = vmatprep.subr.mxu1 %v1611_v57  ;;  %2147 = vrcp.f32 %v2616_v48  ;;  %v1602_v48 = vld [vmem:[#allocation7 + $0x1a8] sm:$0xff] }
 0x36f   :  { %v2132_v55 = vpop.eup %2131  ;;  %2012 = vmatprep.subr.mxu0 %v1456_v41  ;;  %2047 = vmatpush3.msra.mxu1 %v1611_v57  ;;  %2149 = vrcp.f32 %v1431_v3 }
 0x370   :  { %2013 = vmatpush3.msra.mxu0 %v1456_v41  ;;  %v1204_v40 = vmul.f32 %v2132_v55, %v2588_v20  ;;  %2048 = vmatprep.subr.mxu1 %v1610_v54  ;;  %v2134_v56 = vpop.eup %2133  ;;  %v1607_v20 = vld [vmem:[#allocation7 + $0x1d0] sm:$0xff]  ;;  %2151 = vrcp.f32 %v1582_v26 }
 0x371   :  { %2014 = vmatprep.subr.mxu0 %v1455_v45  ;;  %2049 = vmatpush3.msra.mxu1 %v1610_v54  ;;  %v1436_v9 = vmul.f32 %v2134_v56, %v2573_v24  ;;  %v1584_v6 = vpop.xlane.xlu1 %1583 }
 0x372   :  { %2015 = vmatpush3.msra.mxu0 %v1455_v45  ;;  %v1208_v27 = vmax.f32 %v1204_v40, 0.001  ;;  %2050 = vmatprep.subr.mxu1 %v1609_v8  ;;  %2153 = vrcp.f32 %v1584_v6  ;;  %v1597_v45 = vld [vmem:[#allocation7 + $0x180] sm:$0xff] }
 0x373   :  { %v2136_v46 = vpop.eup %2135  ;;  %2016 = vmatprep.subr.mxu0 %v1454_v1  ;;  %2051 = vmatpush3.msra.mxu1 %v1609_v8  ;;  %v1440_v24 = vmax.f32 %v1436_v9, 0.001 }
 0x374   :  { %v2138_v32 = vpop.eup %2137  ;;  %2017 = vmatpush3.msra.mxu0 %v1454_v1  ;;  %v1140_v0 = vmul.f32 %v2136_v46, %v2594_v17  ;;  %2052 = vmatprep.subr.mxu1 %v1608_v21 }
 0x375   :  { %2018 = vmatprep.subr.mxu0 %v1453_v63  ;;  %v1205_v61 = vmul.f32 %v2138_v32, %v2592_v11  ;;  %1965 = vmatprep.mubr.f32.mxu0 %v1208_v27  ;;  %v1450_v11 = vld [vmem:[#allocation7 + $0x130] sm:$0xff] }
 0x376   :  { %2019 = vmatpush3.msra.mxu0 %v1453_v63  ;;  %2053 = vmatpush3.msra.mxu1 %v1608_v21  ;;  %v1144_v29 = vmax.f32 %v1140_v0, 0.001 }
 0x377   :  { %2020 = vmatprep.subr.mxu0 %v1452_v50  ;;  %v1209_v49 = vmax.f32 %v1205_v61, 0.001  ;;  %v2140_v17 = vpop.eup %2139  ;;  %2054 = vmatprep.subr.mxu1 %v1607_v20 }
 0x378   :  { %2021 = vmatpush3.msra.mxu0 %v1452_v50  ;;  %v2142_v52 = vpop.eup %2141  ;;  %2055 = vmatpush3.msra.mxu1 %v1607_v20  ;;  %v1141_v33 = vmul.f32 %v2140_v17, %v2598_v43  ;;  %v1448_v43 = vld [vmem:[#allocation7 + $0x120] sm:$0xff] }
 0x379   :  { %2022 = vmatprep.subr.mxu0 %v1451_v60  ;;  %2056 = vmatprep.subr.mxu1 %v1606_v5  ;;  %v1589_v2 = vmul.f32 %v2142_v52, %v2581_v44  ;;  %v2144_v19 = vpop.eup %2143  ;;  %v1446_v44 = vld [vmem:[#allocation7 + $0x110] sm:$0xff] }
 0x37a   :  { %1966 = vmatmul.mubr.f32.gmra.mxu0 %v1209_v49  ;;  %2003 = vmatprep.mubr.f32.mxu1 %v1144_v29  ;;  %v1145_v13 = vmax.f32 %v1141_v33, 0.001  ;;  %v2146_v31 = vpop.eup %2145  ;;  %v1437_v23 = vmul.f32 %v2144_v19, %v2578_v53 }
 0x37b   :  { %2023 = vmatpush3.msra.mxu0 %v1451_v60  ;;  %2057 = vmatpush3.msra.mxu1 %v1606_v5  ;;  %v1593_v25 = vmax.f32 %v1589_v2, 0.001  ;;  %v2148_v34 = vpop.eup %2147  ;;  %v1438_v39 = vmul.f32 %v2146_v31, %v2600_v58 }
 0x37c   :  { %2024 = vmatprep.subr.mxu0 %v1450_v11  ;;  %2038 = vmatprep.mubr.f32.mxu0 %v1440_v24  ;;  %v2150_v35 = vpop.eup %2149  ;;  %v1441_v14 = vmax.f32 %v1437_v23, 0.001  ;;  %v1590_v53 = vmul.f32 %v2148_v34, %v2586_v38 }
 0x37d   :  { %2058 = vmatprep.subr.mxu1 %v1605_v18  ;;  %2025 = vmatpush3.msra.mxu0 %v1450_v11  ;;  %v2152_v36 = vpop.eup %2151  ;;  %v1439_v7 = vmul.f32 %v2150_v35, %v2604_v22  ;;  %v1442_v57 = vmax.f32 %v1438_v39, 0.001 }
 0x37e   :  { %2059 = vmatpush3.msra.mxu1 %v1605_v18  ;;  %2026 = vmatprep.subr.mxu0 %v1449_v51  ;;  %v1591_v58 = vmul.f32 %v2152_v36, %v2606_v4  ;;  %v1594_v55 = vmax.f32 %v1590_v53, 0.001 }
 0x37f   :  { %2060 = vmatprep.subr.mxu1 %v1604_v10  ;;  %2004 = vmatmul.mubr.f32.gmra.mxu1 %v1145_v13  ;;  %v2154_v41 = vpop.eup %2153  ;;  %v1443_v54 = vmax.f32 %v1439_v7, 0.001 }
 0x380   :  { %2027 = vmatpush3.msra.mxu0 %v1449_v51  ;;  %2061 = vmatpush3.msra.mxu1 %v1604_v10  ;;  %v1592_v1 = vmul.f32 %v2154_v41, %v2610_v30  ;;  %v1595_v22 = vmax.f32 %v1591_v58, 0.001 }
 0x381   :  { %2028 = vmatprep.subr.mxu0 %v1448_v43  ;;  %2062 = vmatprep.subr.mxu1 %v1603_v62 }
 0x382   :  { %2076 = vmatprep.mubr.f32.mxu1 %v1593_v25  ;;  %2029 = vmatpush3.msra.mxu0 %v1448_v43  ;;  %v1596_v38 = vmax.f32 %v1592_v1, 0.001 }
 0x383   :  { %2063 = vmatpush3.msra.mxu1 %v1603_v62  ;;  %2030 = vmatprep.subr.mxu0 %v1447_v47 }
 0x384   :  { %2064 = vmatprep.subr.mxu1 %v1602_v48  ;;  %2031 = vmatpush3.msra.mxu0 %v1447_v47 }
 0x385   :  { %2065 = vmatpush3.msra.mxu1 %v1602_v48  ;;  %2032 = vmatprep.subr.mxu0 %v1446_v44 }
 0x386   :  { %2066 = vmatprep.subr.mxu1 %v1601_v12  ;;  %2033 = vmatpush3.msra.mxu0 %v1446_v44 }
 0x387   :  { %2067 = vmatpush3.msra.mxu1 %v1601_v12  ;;  %2034 = vmatprep.subr.mxu0 %v1445_v15 }
 0x388   :  { %2068 = vmatprep.subr.mxu1 %v1600_v28  ;;  %2035 = vmatpush3.msra.mxu0 %v1445_v15 }
 0x389   :  { %2069 = vmatpush3.msra.mxu1 %v1600_v28  ;;  %2036 = vmatprep.subr.mxu0 %v1444_v37 }
 0x38a   :  { %2070 = vmatprep.subr.mxu1 %v1599_v16  ;;  %2037 = vmatpush3.msra.mxu0 %v1444_v37 }
 0x38b   :  { %2071 = vmatpush3.msra.mxu1 %v1599_v16  ;;  %2039 = vmatmul.mubr.f32.vlgmr.msra.gmra.mxu0 %v1441_v14 }
 0x38c   :  { %2072 = vmatprep.subr.mxu1 %v1598_v42  ;;  %2041 = vmatprep.mubr.f32.mxu0 %v1442_v57 }
 0x38d   :  { %2073 = vmatpush3.msra.mxu1 %v1598_v42 }
 0x38e   :  { %2074 = vmatprep.subr.mxu1 %v1597_v45 }
 0x38f   :  { %2075 = vmatpush3.msra.mxu1 %v1597_v45  ;;  %2042 = vmatmul.mubr.f32.gmra.mxu0 %v1443_v54 }
 0x390   :  { %2077 = vmatmul.mubr.f32.vlgmr.msra.gmra.mxu1 %v1594_v55 }
 0x391   :  { %2079 = vmatprep.mubr.f32.mxu1 %v1595_v22 }
 0x394   :  { %2080 = vmatmul.mubr.f32.gmra.mxu1 %v1596_v38 }
 0x429   :  { %v1964_v8 = vpop.f32.mrf.mxu0 }
 0x42b   :  { %v1292_v40 = vpop.f32.mrf.mxu0 }
 0x42c   :  { %v2002_v56 = vpop.f32.mrf.mxu1 }
 0x42d   :  { %v1383_v46 = vadd.f32 %v2002_v56, %v1964_v8 }
 0x42e   :  { %v1377_v59 = vpop.f32.mrf.mxu1 }
 0x42f   :  { %v1378_v0 = vadd.f32 %v1377_v59, %v1292_v40 }
 0x43a   :  { %v1967_v4 = vpop.f32.mrf.mxu0 }
 0x43c   :  { %v1302_v63 = vpop.f32.mrf.mxu0 }
 0x43f   :  { %v2005_v21 = vpop.f32.mrf.mxu1 }
 0x440   :  { %v1393_v61 = vadd.f32 %v2005_v21, %v1967_v4 }
 0x441   :  { %v1387_v32 = vpop.f32.mrf.mxu1 }
 0x442   :  { %v1388_v9 = vadd.f32 %v1387_v32, %v1302_v63 }
 0x44b   :  { %v2040_v27 = vpop.f32.mrf.mxu0 }
 0x44c   :  { %v1546_v30 = vadd.f32 %v2040_v27, %v1383_v46 }
 0x44d   :  { %v1526_v50 = vpop.f32.mrf.mxu0 }
 0x44e   :  { %v1545_v60 = vadd.f32 %v1526_v50, %v1378_v0 }
 0x44f   :  { %v2043_v3 = vpop.f32.mrf.mxu0 }
 0x450   :  { %v2078_v20 = vpop.f32.mrf.mxu1  ;;  %v1548_v17 = vadd.f32 %v2043_v3, %v1393_v61 }
 0x451   :  { %v1699_v5 = vadd.f32 %v2078_v20, %v1546_v30  ;;  %v1536_v49 = vpop.f32.mrf.mxu0 }
 0x452   :  { %v1679_v29 = vpop.f32.mrf.mxu1  ;;  %v1547_v11 = vadd.f32 %v1536_v49, %v1388_v9 }
 0x453   :  { %1703 = vst [vmem:[#allocation8 + $0x8] sm:$0xff] %v1699_v5  ;;  %v1698_v26 = vadd.f32 %v1679_v29, %v1545_v60 }
 0x454   :  { %v2081_v52 = vpop.f32.mrf.mxu1 }
 0x455   :  { %1702 = vst [vmem:[#allocation8] sm:$0xff] %v1698_v26  ;;  %v1701_v33 = vadd.f32 %v2081_v52, %v1548_v17 }
 0x456   :  { %v1689_v18 = vpop.f32.mrf.mxu1 }
 0x457   :  { %1705 = vst [vmem:[#allocation8 + $0x18] sm:$0xff] %v1701_v33  ;;  %v1700_v6 = vadd.f32 %v1689_v18, %v1547_v11 }
 0x459   :  { %1704 = vst [vmem:[#allocation8 + $0x10] sm:$0xff] %v1700_v6 }
 0x45a   :  { %2226 = shalt.err (!%p2223_p5)
}
 0x45b   :  { %1717 = dma.vmem_to_hbm [thread:$0]  %s1712_s10, 512, %s2647_s6, [#allocation4], %s2246_s3, %s2246_s3, %s2247_s13  }
 0x45c   :  { %2239 = dma.done.wait [#allocation4], 512  }
 0x45d   :  { %2240 = vsyncadd [#allocation4], 4294966784 }
 0x45e   :  { %1721 = vsyncpa [#allocation3], 1 }
 0x45f   :  { %1722 = vsyncpa [#allocation6], 1 }
 0x460   :  { %1723 = vsyncpa [#allocation4], 1 }

</bundles_post_ra>
